<compile_context>
chip_gen: v5e
topology: v5e:2x2
jax: 0.10.0
libtpu: 0.0.40
codegen_flags: <defaults>
</compile_context>

<pallas_src>
import functools

import jax
import jax.numpy as jnp
from jax import lax
from jax.experimental import pallas as pl
from jax.experimental.pallas import tpu as pltpu


def srcnn_kernel(x_ref, m_ref, w1_ref, b1_ref, w2_ref, b2_ref, w3_ref, b3_ref,
                 out_ref, *, h_tile, W, compute_dtype):
    """One (batch, H-tile) step.

    x_ref : (1, 1, Lin)  flat padded row band, Lin = (h_tile+15)*(W+8), f32
    m_ref : (1, 1, Q)    validity mask (1 inside image, 0 in padding/halo), f32
    w1    : (64, 81)     conv1 weights, tap index = kh*9 + kw
    w2    : (32, 64)     conv2 weights
    w3    : (25, 32)     conv3 weights, tap index = kh*5 + kw
    out   : (1, 1, h_tile*(W+8)) flat output rows (garbage in the 8 pad cols)
    """
    Wp = W + 8
    E = h_tile + 6            # conv1/conv2 rows computed per tile (tile + halo)
    Q = E * Wp                # pixels per tile in flat, Wp-strided space
    L_out = h_tile * Wp
    cdt = compute_dtype

    xb = x_ref[...].reshape(1, x_ref.shape[-1])          # (1, Lin) f32

    # ---- conv1 im2col: 81 static lane-dense slices, taps stacked on sublanes.
    # tap(kh, kw)[p] == band_flat[p + kh*Wp + kw]  (p = local_row*Wp + col)
    taps = [xb[:, kh * Wp + kw: kh * Wp + kw + Q]
            for kh in range(9) for kw in range(9)]        # 81 x (1, Q)
    im2col = jnp.concatenate(taps, axis=0).astype(cdt)    # (81, Q)

    # ---- conv1: 9x9, 1 -> 64  == one MXU matmul, + bias + ReLU ---------------
    h1 = jnp.dot(w1_ref[...].astype(cdt), im2col,
                 preferred_element_type=jnp.float32)      # (64, Q) f32 accum
    h1 = jnp.maximum(h1 + b1_ref[...], 0.0)

    # ---- conv2: 1x1, 64 -> 32 == MXU matmul, + bias + ReLU -------------------
    h2 = jnp.dot(w2_ref[...].astype(cdt), h1.astype(cdt),
                 preferred_element_type=jnp.float32)      # (32, Q)
    h2 = jnp.maximum(h2 + b2_ref[...], 0.0)
    # Zero h2 outside the valid image (conv3's zero padding + halo overhang).
    h2 = h2 * m_ref[...].reshape(1, Q)

    # ---- conv3: 5x5, 32 -> 1: contract channels on the MXU, then 25 shifted,
    #      lane-dense adds in the flat Wp-strided pixel space. -----------------
    g = jnp.dot(w3_ref[...].astype(cdt), h2.astype(cdt),
                preferred_element_type=jnp.float32)       # (25, Q)
    acc = jnp.zeros((1, L_out), jnp.float32)
    tap = 0
    for kh3 in range(5):
        for kw3 in range(5):
            # output row jr (local) maps to pixel-space row jr+3; source row is
            # jr+3+(kh3-2), source col is w+(kw3-2) -> flat offset below.
            off = (kh3 + 1) * Wp + (kw3 - 2)
            acc = acc + g[tap:tap + 1, off:off + L_out]
            tap += 1

    # ---- residual add: x read from the interior of the same flat band -------
    res = xb[:, 7 * Wp + 4: 7 * Wp + 4 + L_out]           # f32, exact
    out_ref[...] = (acc + res + b3_ref[0]).reshape(1, 1, L_out)


def _pick_h_tile(H, W, compute_dtype, budget_bytes):
    """Largest divisor of H whose per-step VMEM estimate fits the budget."""
    Wp = W + 8
    esz = jnp.dtype(compute_dtype).itemsize
    # im2col + h1(f32 + cdt copy) + h2(f32 + cdt copy) + g, per pixel:
    per_px = 81 * esz + 64 * (4 + esz) + 32 * (4 + esz) + 25 * 4
    best = 1
    for ht in range(1, H + 1):
        if H % ht:
            continue
        q = (ht + 6) * Wp
        est = q * per_px + 2 * 4 * ((ht + 15) * Wp + ht * Wp + q)  # I/O, 2 bufs
        if est <= budget_bytes:
            best = ht
    return best


def srcnn_forward(x_nchw, params, *, h_tile=None,
                  compute_dtype=jnp.bfloat16,
                  vmem_budget_bytes=12 * 1024 * 1024):
    """x_nchw: (N, 1, H, W) float32; params in PyTorch-native shapes.

    Returns (N, 1, H, W) float32.  compute_dtype=bf16 feeds the MXU at full
    rate on v5e/v6e/v7x (f32 accumulation); use float32 for tight checks.
    """
    w1, b1, w2, b2, w3, b3 = params
    N, C, H, W = x_nchw.shape
    assert C == 1
    if h_tile is None:
        h_tile = _pick_h_tile(H, W, compute_dtype, vmem_budget_bytes)
    assert H % h_tile == 0, "H must be divisible by h_tile"
    T = H // h_tile
    Wp = W + 8
    E = h_tile + 6
    Q = E * Wp
    Lin = (h_tile + 15) * Wp
    L_out = h_tile * Wp

    # ---- layout prep (cheap XLA ops): flat padded rows + overlapping bands --
    # Pad 7 rows on top / 8 below (4 conv1 + 2 conv3-halo recompute + throwaway
    # rows that keep every in-kernel slice static and in bounds), 4 cols l/r.
    x2 = x_nchw[:, 0].astype(jnp.float32)
    xpad = jnp.pad(x2, ((0, 0), (7, 8), (4, 4)))          # (N, H+15, Wp)
    xflat = xpad.reshape(N, (H + 15) * Wp)
    bands = jnp.stack(
        [xflat[:, t * h_tile * Wp: t * h_tile * Wp + Lin] for t in range(T)],
        axis=1).reshape(N * T, 1, Lin)

    # Validity mask per H tile (zero outside the image -> conv3 zero padding).
    rows = jnp.arange(T)[:, None] * h_tile - 3 + jnp.arange(E)[None, :]  # (T,E)
    row_ok = (rows >= 0) & (rows < H)
    col_ok = jnp.arange(Wp) < W
    mask = (row_ok[:, :, None] & col_ok[None, None, :]).astype(jnp.float32)
    mask = mask.reshape(T, 1, Q)

    # Weights in matmul layouts (channels on sublanes).
    w1m = w1.reshape(64, 81)                              # (out, kh*9+kw)
    b1c = b1.reshape(64, 1)
    w2m = w2[:, :, 0, 0]                                  # (32, 64)
    b2c = b2.reshape(32, 1)
    w3m = jnp.transpose(w3[0], (1, 2, 0)).reshape(25, 32)  # (kh*5+kw, c_in)
    b3v = b3.reshape(1)

    kernel = functools.partial(srcnn_kernel, h_tile=h_tile, W=W,
                               compute_dtype=compute_dtype)
    out = pl.pallas_call(
        kernel,
        out_shape=jax.ShapeDtypeStruct((N * T, 1, L_out), jnp.float32),
        grid_spec=pltpu.PrefetchScalarGridSpec(
            num_scalar_prefetch=0,
            grid=(N, T),
            in_specs=[
                pl.BlockSpec((1, 1, Lin), lambda b, t: (b * T + t, 0, 0)),
                pl.BlockSpec((1, 1, Q), lambda b, t: (t, 0, 0)),
                pl.BlockSpec((64, 81), lambda b, t: (0, 0)),
                pl.BlockSpec((64, 1), lambda b, t: (0, 0)),
                pl.BlockSpec((32, 64), lambda b, t: (0, 0)),
                pl.BlockSpec((32, 1), lambda b, t: (0, 0)),
                pl.BlockSpec((25, 32), lambda b, t: (0, 0)),
                pl.BlockSpec(memory_space=pltpu.MemorySpace.SMEM),  # b3 scalar
            ],
            out_specs=pl.BlockSpec((1, 1, L_out),
                                   lambda b, t: (b * T + t, 0, 0)),
        ),
        compiler_params=pltpu.CompilerParams(
            dimension_semantics=("parallel", "parallel"),
            vmem_limit_bytes=32 * 1024 * 1024),
    )(bands, mask, w1m, b1c, w2m, b2c, w3m, b3v)

    # Strip the 8 garbage pad columns, back to NCHW.
    out = out.reshape(N, T, h_tile, Wp)[:, :, :, :W].reshape(N, H, W)
    return out[:, None, :, :]


def srcnn_reference(x_nchw, params):
    """Pure-JAX reference (lax convolutions) for correctness checking."""
    w1, b1, w2, b2, w3, b3 = params
    dn = ('NCHW', 'OIHW', 'NCHW')
    h = lax.conv_general_dilated(x_nchw, w1, (1, 1), [(4, 4), (4, 4)],
                                 dimension_numbers=dn) + b1[None, :, None, None]
    h = jnp.maximum(h, 0.0)
    h = lax.conv_general_dilated(h, w2, (1, 1), [(0, 0), (0, 0)],
                                 dimension_numbers=dn) + b2[None, :, None, None]
    h = jnp.maximum(h, 0.0)
    h = lax.conv_general_dilated(h, w3, (1, 1), [(2, 2), (2, 2)],
                                 dimension_numbers=dn) + b3[None, :, None, None]
    return x_nchw + h


def init_params(key):
    """Deterministic synthetic parameters in PyTorch-native shapes."""
    ks = jax.random.split(key, 6)
    w1 = jax.random.normal(ks[0], (64, 1, 9, 9), jnp.float32) * 0.05
    b1 = jax.random.normal(ks[1], (64,), jnp.float32) * 0.05
    w2 = jax.random.normal(ks[2], (32, 64, 1, 1), jnp.float32) * 0.05
    b2 = jax.random.normal(ks[3], (32,), jnp.float32) * 0.05
    w3 = jax.random.normal(ks[4], (1, 32, 5, 5), jnp.float32) * 0.05
    b3 = jax.random.normal(ks[5], (1,), jnp.float32) * 0.05
    return (w1, b1, w2, b2, w3, b3)


if __name__ == "__main__":
    key = jax.random.PRNGKey(0)
    k_x, k_p = jax.random.split(key)
    N, C, H, W = 2, 1, 16, 16
    x = jax.random.normal(k_x, (N, C, H, W), jnp.float32)
    params = init_params(k_p)

    ref = jax.block_until_ready(srcnn_reference(x, params))

    # f32 compute, explicit 2-way H tiling (exercises the halo / tile edges).
    out32 = jax.block_until_ready(
        srcnn_forward(x, params, h_tile=8, compute_dtype=jnp.float32))
    assert out32.shape == (N, C, H, W)
    err32 = float(jnp.max(jnp.abs(out32 - ref)))
    assert err32 < 2e-3, f"f32 max err {err32}"

    # Default path: bf16 MXU operands, auto h_tile (looser tolerance).
    outbf = jax.block_until_ready(srcnn_forward(x, params))
    errbf = float(jnp.max(jnp.abs(outbf - ref)))
    assert errbf < 6e-2, f"bf16 max err {errbf}"

    print("KERNEL_OK")
</pallas_src>

<mosaic_0001>
module attributes {stable_mosaic.version = 11 : i64} {
  func.func @srcnn_kernel(%arg0: i32, %arg1: i32, %arg2: memref<1x1x552xf32, #tpu.memory_space<vmem>>, %arg3: memref<1x1x336xf32, #tpu.memory_space<vmem>>, %arg4: memref<64x81xf32, #tpu.memory_space<vmem>>, %arg5: memref<64x1xf32, #tpu.memory_space<vmem>>, %arg6: memref<32x64xf32, #tpu.memory_space<vmem>>, %arg7: memref<32x1xf32, #tpu.memory_space<vmem>>, %arg8: memref<25x32xf32, #tpu.memory_space<vmem>>, %arg9: memref<1xf32, #tpu.memory_space<smem>>, %arg10: memref<1x1x192xf32, #tpu.memory_space<vmem>>) attributes {dimension_semantics = [#tpu.dimension_semantics<parallel>, #tpu.dimension_semantics<parallel>], iteration_bounds = array<i64: 2, 2>, scalar_prefetch = 0 : i64, scratch_operands = 0 : i64, tpu.core_type = #tpu.core_type<tc>, window_params = [{transform_indices = @transform_0, window_bounds = array<i64: 1, 1, 552>}, {transform_indices = @transform_1, window_bounds = array<i64: 1, 1, 336>}, {pipeline_mode = #tpu.pipeline_mode<synchronous>, transform_indices = @transform_2, window_bounds = array<i64: 64, 81>}, {pipeline_mode = #tpu.pipeline_mode<synchronous>, transform_indices = @transform_3, window_bounds = array<i64: 64, 1>}, {pipeline_mode = #tpu.pipeline_mode<synchronous>, transform_indices = @transform_4, window_bounds = array<i64: 32, 64>}, {pipeline_mode = #tpu.pipeline_mode<synchronous>, transform_indices = @transform_5, window_bounds = array<i64: 32, 1>}, {pipeline_mode = #tpu.pipeline_mode<synchronous>, transform_indices = @transform_6, window_bounds = array<i64: 25, 32>}, {transform_indices = @transform_7, window_bounds = array<i64: 1>}, {transform_indices = @transform_8, window_bounds = array<i64: 1, 1, 192>}]} {
    %c0 = arith.constant 0 : index
    %c0_0 = arith.constant 0 : index
    %c0_1 = arith.constant 0 : index
    %0 = vector.load %arg2[%c0, %c0_0, %c0_1] : memref<1x1x552xf32, #tpu.memory_space<vmem>>, vector<1x1x552xf32>
    %1 = vector.shape_cast %0 : vector<1x1x552xf32> to vector<1x552xf32>
    %2 = vector.extract_strided_slice %1 {offsets = [0, 0], sizes = [1, 336], strides = [1, 1]} : vector<1x552xf32> to vector<1x336xf32>
    %3 = vector.extract_strided_slice %1 {offsets = [0, 1], sizes = [1, 336], strides = [1, 1]} : vector<1x552xf32> to vector<1x336xf32>
    %4 = vector.extract_strided_slice %1 {offsets = [0, 2], sizes = [1, 336], strides = [1, 1]} : vector<1x552xf32> to vector<1x336xf32>
    %5 = vector.extract_strided_slice %1 {offsets = [0, 3], sizes = [1, 336], strides = [1, 1]} : vector<1x552xf32> to vector<1x336xf32>
    %6 = vector.extract_strided_slice %1 {offsets = [0, 4], sizes = [1, 336], strides = [1, 1]} : vector<1x552xf32> to vector<1x336xf32>
    %7 = vector.extract_strided_slice %1 {offsets = [0, 5], sizes = [1, 336], strides = [1, 1]} : vector<1x552xf32> to vector<1x336xf32>
    %8 = vector.extract_strided_slice %1 {offsets = [0, 6], sizes = [1, 336], strides = [1, 1]} : vector<1x552xf32> to vector<1x336xf32>
    %9 = vector.extract_strided_slice %1 {offsets = [0, 7], sizes = [1, 336], strides = [1, 1]} : vector<1x552xf32> to vector<1x336xf32>
    %10 = vector.extract_strided_slice %1 {offsets = [0, 8], sizes = [1, 336], strides = [1, 1]} : vector<1x552xf32> to vector<1x336xf32>
    %11 = vector.extract_strided_slice %1 {offsets = [0, 24], sizes = [1, 336], strides = [1, 1]} : vector<1x552xf32> to vector<1x336xf32>
    %12 = vector.extract_strided_slice %1 {offsets = [0, 25], sizes = [1, 336], strides = [1, 1]} : vector<1x552xf32> to vector<1x336xf32>
    %13 = vector.extract_strided_slice %1 {offsets = [0, 26], sizes = [1, 336], strides = [1, 1]} : vector<1x552xf32> to vector<1x336xf32>
    %14 = vector.extract_strided_slice %1 {offsets = [0, 27], sizes = [1, 336], strides = [1, 1]} : vector<1x552xf32> to vector<1x336xf32>
    %15 = vector.extract_strided_slice %1 {offsets = [0, 28], sizes = [1, 336], strides = [1, 1]} : vector<1x552xf32> to vector<1x336xf32>
    %16 = vector.extract_strided_slice %1 {offsets = [0, 29], sizes = [1, 336], strides = [1, 1]} : vector<1x552xf32> to vector<1x336xf32>
    %17 = vector.extract_strided_slice %1 {offsets = [0, 30], sizes = [1, 336], strides = [1, 1]} : vector<1x552xf32> to vector<1x336xf32>
    %18 = vector.extract_strided_slice %1 {offsets = [0, 31], sizes = [1, 336], strides = [1, 1]} : vector<1x552xf32> to vector<1x336xf32>
    %19 = vector.extract_strided_slice %1 {offsets = [0, 32], sizes = [1, 336], strides = [1, 1]} : vector<1x552xf32> to vector<1x336xf32>
    %20 = vector.extract_strided_slice %1 {offsets = [0, 48], sizes = [1, 336], strides = [1, 1]} : vector<1x552xf32> to vector<1x336xf32>
    %21 = vector.extract_strided_slice %1 {offsets = [0, 49], sizes = [1, 336], strides = [1, 1]} : vector<1x552xf32> to vector<1x336xf32>
    %22 = vector.extract_strided_slice %1 {offsets = [0, 50], sizes = [1, 336], strides = [1, 1]} : vector<1x552xf32> to vector<1x336xf32>
    %23 = vector.extract_strided_slice %1 {offsets = [0, 51], sizes = [1, 336], strides = [1, 1]} : vector<1x552xf32> to vector<1x336xf32>
    %24 = vector.extract_strided_slice %1 {offsets = [0, 52], sizes = [1, 336], strides = [1, 1]} : vector<1x552xf32> to vector<1x336xf32>
    %25 = vector.extract_strided_slice %1 {offsets = [0, 53], sizes = [1, 336], strides = [1, 1]} : vector<1x552xf32> to vector<1x336xf32>
    %26 = vector.extract_strided_slice %1 {offsets = [0, 54], sizes = [1, 336], strides = [1, 1]} : vector<1x552xf32> to vector<1x336xf32>
    %27 = vector.extract_strided_slice %1 {offsets = [0, 55], sizes = [1, 336], strides = [1, 1]} : vector<1x552xf32> to vector<1x336xf32>
    %28 = vector.extract_strided_slice %1 {offsets = [0, 56], sizes = [1, 336], strides = [1, 1]} : vector<1x552xf32> to vector<1x336xf32>
    %29 = vector.extract_strided_slice %1 {offsets = [0, 72], sizes = [1, 336], strides = [1, 1]} : vector<1x552xf32> to vector<1x336xf32>
    %30 = vector.extract_strided_slice %1 {offsets = [0, 73], sizes = [1, 336], strides = [1, 1]} : vector<1x552xf32> to vector<1x336xf32>
    %31 = vector.extract_strided_slice %1 {offsets = [0, 74], sizes = [1, 336], strides = [1, 1]} : vector<1x552xf32> to vector<1x336xf32>
    %32 = vector.extract_strided_slice %1 {offsets = [0, 75], sizes = [1, 336], strides = [1, 1]} : vector<1x552xf32> to vector<1x336xf32>
    %33 = vector.extract_strided_slice %1 {offsets = [0, 76], sizes = [1, 336], strides = [1, 1]} : vector<1x552xf32> to vector<1x336xf32>
    %34 = vector.extract_strided_slice %1 {offsets = [0, 77], sizes = [1, 336], strides = [1, 1]} : vector<1x552xf32> to vector<1x336xf32>
    %35 = vector.extract_strided_slice %1 {offsets = [0, 78], sizes = [1, 336], strides = [1, 1]} : vector<1x552xf32> to vector<1x336xf32>
    %36 = vector.extract_strided_slice %1 {offsets = [0, 79], sizes = [1, 336], strides = [1, 1]} : vector<1x552xf32> to vector<1x336xf32>
    %37 = vector.extract_strided_slice %1 {offsets = [0, 80], sizes = [1, 336], strides = [1, 1]} : vector<1x552xf32> to vector<1x336xf32>
    %38 = vector.extract_strided_slice %1 {offsets = [0, 96], sizes = [1, 336], strides = [1, 1]} : vector<1x552xf32> to vector<1x336xf32>
    %39 = vector.extract_strided_slice %1 {offsets = [0, 97], sizes = [1, 336], strides = [1, 1]} : vector<1x552xf32> to vector<1x336xf32>
    %40 = vector.extract_strided_slice %1 {offsets = [0, 98], sizes = [1, 336], strides = [1, 1]} : vector<1x552xf32> to vector<1x336xf32>
    %41 = vector.extract_strided_slice %1 {offsets = [0, 99], sizes = [1, 336], strides = [1, 1]} : vector<1x552xf32> to vector<1x336xf32>
    %42 = vector.extract_strided_slice %1 {offsets = [0, 100], sizes = [1, 336], strides = [1, 1]} : vector<1x552xf32> to vector<1x336xf32>
    %43 = vector.extract_strided_slice %1 {offsets = [0, 101], sizes = [1, 336], strides = [1, 1]} : vector<1x552xf32> to vector<1x336xf32>
    %44 = vector.extract_strided_slice %1 {offsets = [0, 102], sizes = [1, 336], strides = [1, 1]} : vector<1x552xf32> to vector<1x336xf32>
    %45 = vector.extract_strided_slice %1 {offsets = [0, 103], sizes = [1, 336], strides = [1, 1]} : vector<1x552xf32> to vector<1x336xf32>
    %46 = vector.extract_strided_slice %1 {offsets = [0, 104], sizes = [1, 336], strides = [1, 1]} : vector<1x552xf32> to vector<1x336xf32>
    %47 = vector.extract_strided_slice %1 {offsets = [0, 120], sizes = [1, 336], strides = [1, 1]} : vector<1x552xf32> to vector<1x336xf32>
    %48 = vector.extract_strided_slice %1 {offsets = [0, 121], sizes = [1, 336], strides = [1, 1]} : vector<1x552xf32> to vector<1x336xf32>
    %49 = vector.extract_strided_slice %1 {offsets = [0, 122], sizes = [1, 336], strides = [1, 1]} : vector<1x552xf32> to vector<1x336xf32>
    %50 = vector.extract_strided_slice %1 {offsets = [0, 123], sizes = [1, 336], strides = [1, 1]} : vector<1x552xf32> to vector<1x336xf32>
    %51 = vector.extract_strided_slice %1 {offsets = [0, 124], sizes = [1, 336], strides = [1, 1]} : vector<1x552xf32> to vector<1x336xf32>
    %52 = vector.extract_strided_slice %1 {offsets = [0, 125], sizes = [1, 336], strides = [1, 1]} : vector<1x552xf32> to vector<1x336xf32>
    %53 = vector.extract_strided_slice %1 {offsets = [0, 126], sizes = [1, 336], strides = [1, 1]} : vector<1x552xf32> to vector<1x336xf32>
    %54 = vector.extract_strided_slice %1 {offsets = [0, 127], sizes = [1, 336], strides = [1, 1]} : vector<1x552xf32> to vector<1x336xf32>
    %55 = vector.extract_strided_slice %1 {offsets = [0, 128], sizes = [1, 336], strides = [1, 1]} : vector<1x552xf32> to vector<1x336xf32>
    %56 = vector.extract_strided_slice %1 {offsets = [0, 144], sizes = [1, 336], strides = [1, 1]} : vector<1x552xf32> to vector<1x336xf32>
    %57 = vector.extract_strided_slice %1 {offsets = [0, 145], sizes = [1, 336], strides = [1, 1]} : vector<1x552xf32> to vector<1x336xf32>
    %58 = vector.extract_strided_slice %1 {offsets = [0, 146], sizes = [1, 336], strides = [1, 1]} : vector<1x552xf32> to vector<1x336xf32>
    %59 = vector.extract_strided_slice %1 {offsets = [0, 147], sizes = [1, 336], strides = [1, 1]} : vector<1x552xf32> to vector<1x336xf32>
    %60 = vector.extract_strided_slice %1 {offsets = [0, 148], sizes = [1, 336], strides = [1, 1]} : vector<1x552xf32> to vector<1x336xf32>
    %61 = vector.extract_strided_slice %1 {offsets = [0, 149], sizes = [1, 336], strides = [1, 1]} : vector<1x552xf32> to vector<1x336xf32>
    %62 = vector.extract_strided_slice %1 {offsets = [0, 150], sizes = [1, 336], strides = [1, 1]} : vector<1x552xf32> to vector<1x336xf32>
    %63 = vector.extract_strided_slice %1 {offsets = [0, 151], sizes = [1, 336], strides = [1, 1]} : vector<1x552xf32> to vector<1x336xf32>
    %64 = vector.extract_strided_slice %1 {offsets = [0, 152], sizes = [1, 336], strides = [1, 1]} : vector<1x552xf32> to vector<1x336xf32>
    %65 = vector.extract_strided_slice %1 {offsets = [0, 168], sizes = [1, 336], strides = [1, 1]} : vector<1x552xf32> to vector<1x336xf32>
    %66 = vector.extract_strided_slice %1 {offsets = [0, 169], sizes = [1, 336], strides = [1, 1]} : vector<1x552xf32> to vector<1x336xf32>
    %67 = vector.extract_strided_slice %1 {offsets = [0, 170], sizes = [1, 336], strides = [1, 1]} : vector<1x552xf32> to vector<1x336xf32>
    %68 = vector.extract_strided_slice %1 {offsets = [0, 171], sizes = [1, 336], strides = [1, 1]} : vector<1x552xf32> to vector<1x336xf32>
    %69 = vector.extract_strided_slice %1 {offsets = [0, 172], sizes = [1, 336], strides = [1, 1]} : vector<1x552xf32> to vector<1x336xf32>
    %70 = vector.extract_strided_slice %1 {offsets = [0, 173], sizes = [1, 336], strides = [1, 1]} : vector<1x552xf32> to vector<1x336xf32>
    %71 = vector.extract_strided_slice %1 {offsets = [0, 174], sizes = [1, 336], strides = [1, 1]} : vector<1x552xf32> to vector<1x336xf32>
    %72 = vector.extract_strided_slice %1 {offsets = [0, 175], sizes = [1, 336], strides = [1, 1]} : vector<1x552xf32> to vector<1x336xf32>
    %73 = vector.extract_strided_slice %1 {offsets = [0, 176], sizes = [1, 336], strides = [1, 1]} : vector<1x552xf32> to vector<1x336xf32>
    %74 = vector.extract_strided_slice %1 {offsets = [0, 192], sizes = [1, 336], strides = [1, 1]} : vector<1x552xf32> to vector<1x336xf32>
    %75 = vector.extract_strided_slice %1 {offsets = [0, 193], sizes = [1, 336], strides = [1, 1]} : vector<1x552xf32> to vector<1x336xf32>
    %76 = vector.extract_strided_slice %1 {offsets = [0, 194], sizes = [1, 336], strides = [1, 1]} : vector<1x552xf32> to vector<1x336xf32>
    %77 = vector.extract_strided_slice %1 {offsets = [0, 195], sizes = [1, 336], strides = [1, 1]} : vector<1x552xf32> to vector<1x336xf32>
    %78 = vector.extract_strided_slice %1 {offsets = [0, 196], sizes = [1, 336], strides = [1, 1]} : vector<1x552xf32> to vector<1x336xf32>
    %79 = vector.extract_strided_slice %1 {offsets = [0, 197], sizes = [1, 336], strides = [1, 1]} : vector<1x552xf32> to vector<1x336xf32>
    %80 = vector.extract_strided_slice %1 {offsets = [0, 198], sizes = [1, 336], strides = [1, 1]} : vector<1x552xf32> to vector<1x336xf32>
    %81 = vector.extract_strided_slice %1 {offsets = [0, 199], sizes = [1, 336], strides = [1, 1]} : vector<1x552xf32> to vector<1x336xf32>
    %82 = vector.extract_strided_slice %1 {offsets = [0, 200], sizes = [1, 336], strides = [1, 1]} : vector<1x552xf32> to vector<1x336xf32>
    %83 = tpu.concatenate %2, %3, %4, %5, %6, %7, %8, %9, %10, %11, %12, %13, %14, %15, %16, %17 in 0 : vector<1x336xf32>, vector<1x336xf32>, vector<1x336xf32>, vector<1x336xf32>, vector<1x336xf32>, vector<1x336xf32>, vector<1x336xf32>, vector<1x336xf32>, vector<1x336xf32>, vector<1x336xf32>, vector<1x336xf32>, vector<1x336xf32>, vector<1x336xf32>, vector<1x336xf32>, vector<1x336xf32>, vector<1x336xf32> -> vector<16x336xf32>
    %84 = tpu.concatenate %18, %19, %20, %21, %22, %23, %24, %25, %26, %27, %28, %29, %30, %31, %32, %33 in 0 : vector<1x336xf32>, vector<1x336xf32>, vector<1x336xf32>, vector<1x336xf32>, vector<1x336xf32>, vector<1x336xf32>, vector<1x336xf32>, vector<1x336xf32>, vector<1x336xf32>, vector<1x336xf32>, vector<1x336xf32>, vector<1x336xf32>, vector<1x336xf32>, vector<1x336xf32>, vector<1x336xf32>, vector<1x336xf32> -> vector<16x336xf32>
    %85 = tpu.concatenate %34, %35, %36, %37, %38, %39, %40, %41, %42, %43, %44, %45, %46, %47, %48, %49 in 0 : vector<1x336xf32>, vector<1x336xf32>, vector<1x336xf32>, vector<1x336xf32>, vector<1x336xf32>, vector<1x336xf32>, vector<1x336xf32>, vector<1x336xf32>, vector<1x336xf32>, vector<1x336xf32>, vector<1x336xf32>, vector<1x336xf32>, vector<1x336xf32>, vector<1x336xf32>, vector<1x336xf32>, vector<1x336xf32> -> vector<16x336xf32>
    %86 = tpu.concatenate %50, %51, %52, %53, %54, %55, %56, %57, %58, %59, %60, %61, %62, %63, %64, %65 in 0 : vector<1x336xf32>, vector<1x336xf32>, vector<1x336xf32>, vector<1x336xf32>, vector<1x336xf32>, vector<1x336xf32>, vector<1x336xf32>, vector<1x336xf32>, vector<1x336xf32>, vector<1x336xf32>, vector<1x336xf32>, vector<1x336xf32>, vector<1x336xf32>, vector<1x336xf32>, vector<1x336xf32>, vector<1x336xf32> -> vector<16x336xf32>
    %87 = tpu.concatenate %66, %67, %68, %69, %70, %71, %72, %73, %74, %75, %76, %77, %78, %79, %80, %81 in 0 : vector<1x336xf32>, vector<1x336xf32>, vector<1x336xf32>, vector<1x336xf32>, vector<1x336xf32>, vector<1x336xf32>, vector<1x336xf32>, vector<1x336xf32>, vector<1x336xf32>, vector<1x336xf32>, vector<1x336xf32>, vector<1x336xf32>, vector<1x336xf32>, vector<1x336xf32>, vector<1x336xf32>, vector<1x336xf32> -> vector<16x336xf32>
    %88 = tpu.concatenate %83, %84, %85, %86, %87, %82 in 0 : vector<16x336xf32>, vector<16x336xf32>, vector<16x336xf32>, vector<16x336xf32>, vector<16x336xf32>, vector<1x336xf32> -> vector<81x336xf32>
    %c0_2 = arith.constant 0 : index
    %c0_3 = arith.constant 0 : index
    %89 = vector.load %arg4[%c0_2, %c0_3] : memref<64x81xf32, #tpu.memory_space<vmem>>, vector<64x81xf32>
    %cst = arith.constant dense<0.000000e+00> : vector<64x336xf32>
    %90 = tpu.matmul %89, %88, %cst {dimension_numbers = #tpu.dot_dimension_numbers<[1], [0], [0], [1], [0, 0, 1, 1], [], []>} : vector<64x81xf32>, vector<81x336xf32>, vector<64x336xf32> -> vector<64x336xf32>
    %c0_4 = arith.constant 0 : index
    %c0_5 = arith.constant 0 : index
    %91 = vector.load %arg5[%c0_4, %c0_5] : memref<64x1xf32, #tpu.memory_space<vmem>>, vector<64x1xf32>
    %92 = vector.broadcast %91 : vector<64x1xf32> to vector<64x336xf32>
    %93 = arith.addf %90, %92 : vector<64x336xf32>
    %cst_6 = arith.constant 0.000000e+00 : f32
    %94 = vector.broadcast %cst_6 : f32 to vector<64x336xf32>
    %95 = arith.maximumf %93, %94 : vector<64x336xf32>
    %c0_7 = arith.constant 0 : index
    %c0_8 = arith.constant 0 : index
    %96 = vector.load %arg6[%c0_7, %c0_8] : memref<32x64xf32, #tpu.memory_space<vmem>>, vector<32x64xf32>
    %cst_9 = arith.constant dense<0.000000e+00> : vector<32x336xf32>
    %97 = tpu.matmul %96, %95, %cst_9 {dimension_numbers = #tpu.dot_dimension_numbers<[1], [0], [0], [1], [0, 0, 1, 1], [], []>} : vector<32x64xf32>, vector<64x336xf32>, vector<32x336xf32> -> vector<32x336xf32>
    %c0_10 = arith.constant 0 : index
    %c0_11 = arith.constant 0 : index
    %98 = vector.load %arg7[%c0_10, %c0_11] : memref<32x1xf32, #tpu.memory_space<vmem>>, vector<32x1xf32>
    %99 = vector.broadcast %98 : vector<32x1xf32> to vector<32x336xf32>
    %100 = arith.addf %97, %99 : vector<32x336xf32>
    %cst_12 = arith.constant 0.000000e+00 : f32
    %101 = vector.broadcast %cst_12 : f32 to vector<32x336xf32>
    %102 = arith.maximumf %100, %101 : vector<32x336xf32>
    %c0_13 = arith.constant 0 : index
    %c0_14 = arith.constant 0 : index
    %c0_15 = arith.constant 0 : index
    %103 = vector.load %arg3[%c0_13, %c0_14, %c0_15] : memref<1x1x336xf32, #tpu.memory_space<vmem>>, vector<1x1x336xf32>
    %104 = vector.shape_cast %103 : vector<1x1x336xf32> to vector<1x336xf32>
    %105 = vector.broadcast %104 : vector<1x336xf32> to vector<32x336xf32>
    %106 = arith.mulf %102, %105 : vector<32x336xf32>
    %c0_16 = arith.constant 0 : index
    %c0_17 = arith.constant 0 : index
    %107 = vector.load %arg8[%c0_16, %c0_17] : memref<25x32xf32, #tpu.memory_space<vmem>>, vector<25x32xf32>
    %cst_18 = arith.constant dense<0.000000e+00> : vector<25x336xf32>
    %108 = tpu.matmul %107, %106, %cst_18 {dimension_numbers = #tpu.dot_dimension_numbers<[1], [0], [0], [1], [0, 0, 1, 1], [], []>} : vector<25x32xf32>, vector<32x336xf32>, vector<25x336xf32> -> vector<25x336xf32>
    %cst_19 = arith.constant 0.000000e+00 : f32
    %109 = vector.broadcast %cst_19 : f32 to vector<1x192xf32>
    %110 = vector.extract_strided_slice %108 {offsets = [0, 22], sizes = [1, 192], strides = [1, 1]} : vector<25x336xf32> to vector<1x192xf32>
    %111 = arith.addf %109, %110 : vector<1x192xf32>
    %112 = vector.extract_strided_slice %108 {offsets = [1, 23], sizes = [1, 192], strides = [1, 1]} : vector<25x336xf32> to vector<1x192xf32>
    %113 = arith.addf %111, %112 : vector<1x192xf32>
    %114 = vector.extract_strided_slice %108 {offsets = [2, 24], sizes = [1, 192], strides = [1, 1]} : vector<25x336xf32> to vector<1x192xf32>
    %115 = arith.addf %113, %114 : vector<1x192xf32>
    %116 = vector.extract_strided_slice %108 {offsets = [3, 25], sizes = [1, 192], strides = [1, 1]} : vector<25x336xf32> to vector<1x192xf32>
    %117 = arith.addf %115, %116 : vector<1x192xf32>
    %118 = vector.extract_strided_slice %108 {offsets = [4, 26], sizes = [1, 192], strides = [1, 1]} : vector<25x336xf32> to vector<1x192xf32>
    %119 = arith.addf %117, %118 : vector<1x192xf32>
    %120 = vector.extract_strided_slice %108 {offsets = [5, 46], sizes = [1, 192], strides = [1, 1]} : vector<25x336xf32> to vector<1x192xf32>
    %121 = arith.addf %119, %120 : vector<1x192xf32>
    %122 = vector.extract_strided_slice %108 {offsets = [6, 47], sizes = [1, 192], strides = [1, 1]} : vector<25x336xf32> to vector<1x192xf32>
    %123 = arith.addf %121, %122 : vector<1x192xf32>
    %124 = vector.extract_strided_slice %108 {offsets = [7, 48], sizes = [1, 192], strides = [1, 1]} : vector<25x336xf32> to vector<1x192xf32>
    %125 = arith.addf %123, %124 : vector<1x192xf32>
    %126 = vector.extract_strided_slice %108 {offsets = [8, 49], sizes = [1, 192], strides = [1, 1]} : vector<25x336xf32> to vector<1x192xf32>
    %127 = arith.addf %125, %126 : vector<1x192xf32>
    %128 = vector.extract_strided_slice %108 {offsets = [9, 50], sizes = [1, 192], strides = [1, 1]} : vector<25x336xf32> to vector<1x192xf32>
    %129 = arith.addf %127, %128 : vector<1x192xf32>
    %130 = vector.extract_strided_slice %108 {offsets = [10, 70], sizes = [1, 192], strides = [1, 1]} : vector<25x336xf32> to vector<1x192xf32>
    %131 = arith.addf %129, %130 : vector<1x192xf32>
    %132 = vector.extract_strided_slice %108 {offsets = [11, 71], sizes = [1, 192], strides = [1, 1]} : vector<25x336xf32> to vector<1x192xf32>
    %133 = arith.addf %131, %132 : vector<1x192xf32>
    %134 = vector.extract_strided_slice %108 {offsets = [12, 72], sizes = [1, 192], strides = [1, 1]} : vector<25x336xf32> to vector<1x192xf32>
    %135 = arith.addf %133, %134 : vector<1x192xf32>
    %136 = vector.extract_strided_slice %108 {offsets = [13, 73], sizes = [1, 192], strides = [1, 1]} : vector<25x336xf32> to vector<1x192xf32>
    %137 = arith.addf %135, %136 : vector<1x192xf32>
    %138 = vector.extract_strided_slice %108 {offsets = [14, 74], sizes = [1, 192], strides = [1, 1]} : vector<25x336xf32> to vector<1x192xf32>
    %139 = arith.addf %137, %138 : vector<1x192xf32>
    %140 = vector.extract_strided_slice %108 {offsets = [15, 94], sizes = [1, 192], strides = [1, 1]} : vector<25x336xf32> to vector<1x192xf32>
    %141 = arith.addf %139, %140 : vector<1x192xf32>
    %142 = vector.extract_strided_slice %108 {offsets = [16, 95], sizes = [1, 192], strides = [1, 1]} : vector<25x336xf32> to vector<1x192xf32>
    %143 = arith.addf %141, %142 : vector<1x192xf32>
    %144 = vector.extract_strided_slice %108 {offsets = [17, 96], sizes = [1, 192], strides = [1, 1]} : vector<25x336xf32> to vector<1x192xf32>
    %145 = arith.addf %143, %144 : vector<1x192xf32>
    %146 = vector.extract_strided_slice %108 {offsets = [18, 97], sizes = [1, 192], strides = [1, 1]} : vector<25x336xf32> to vector<1x192xf32>
    %147 = arith.addf %145, %146 : vector<1x192xf32>
    %148 = vector.extract_strided_slice %108 {offsets = [19, 98], sizes = [1, 192], strides = [1, 1]} : vector<25x336xf32> to vector<1x192xf32>
    %149 = arith.addf %147, %148 : vector<1x192xf32>
    %150 = vector.extract_strided_slice %108 {offsets = [20, 118], sizes = [1, 192], strides = [1, 1]} : vector<25x336xf32> to vector<1x192xf32>
    %151 = arith.addf %149, %150 : vector<1x192xf32>
    %152 = vector.extract_strided_slice %108 {offsets = [21, 119], sizes = [1, 192], strides = [1, 1]} : vector<25x336xf32> to vector<1x192xf32>
    %153 = arith.addf %151, %152 : vector<1x192xf32>
    %154 = vector.extract_strided_slice %108 {offsets = [22, 120], sizes = [1, 192], strides = [1, 1]} : vector<25x336xf32> to vector<1x192xf32>
    %155 = arith.addf %153, %154 : vector<1x192xf32>
    %156 = vector.extract_strided_slice %108 {offsets = [23, 121], sizes = [1, 192], strides = [1, 1]} : vector<25x336xf32> to vector<1x192xf32>
    %157 = arith.addf %155, %156 : vector<1x192xf32>
    %158 = vector.extract_strided_slice %108 {offsets = [24, 122], sizes = [1, 192], strides = [1, 1]} : vector<25x336xf32> to vector<1x192xf32>
    %159 = arith.addf %157, %158 : vector<1x192xf32>
    %160 = vector.extract_strided_slice %1 {offsets = [0, 172], sizes = [1, 192], strides = [1, 1]} : vector<1x552xf32> to vector<1x192xf32>
    %161 = arith.addf %159, %160 : vector<1x192xf32>
    %c0_20 = arith.constant 0 : index
    %162 = memref.load %arg9[%c0_20] : memref<1xf32, #tpu.memory_space<smem>>
    %163 = vector.broadcast %162 : f32 to vector<1x192xf32>
    %164 = arith.addf %161, %163 : vector<1x192xf32>
    %165 = vector.shape_cast %164 : vector<1x192xf32> to vector<1x1x192xf32>
    %c0_21 = arith.constant 0 : index
    %c0_22 = arith.constant 0 : index
    %c0_23 = arith.constant 0 : index
    %166 = vector.load %arg10[%c0_21, %c0_22, %c0_23] : memref<1x1x192xf32, #tpu.memory_space<vmem>>, vector<1x1x192xf32>
    tpu.vector_store %arg10[%c0_21, %c0_22, %c0_23], %165 {strides = array<i32>} : memref<1x1x192xf32, #tpu.memory_space<vmem>>, vector<1x1x192xf32>,
    return
  }
  func.func @transform_0(%arg0: i32, %arg1: i32) -> (i32, i32, i32) {
    %c2_i32 = arith.constant 2 : i32
    %0 = arith.muli %arg0, %c2_i32 : i32
    %1 = arith.addi %0, %arg1 : i32
    %c0_i32 = arith.constant 0 : i32
    %c0_i32_0 = arith.constant 0 : i32
    %c0_i32_1 = arith.constant 0 : i32
    return %1, %c0_i32, %c0_i32_0 : i32, i32, i32
  }
  func.func @transform_1(%arg0: i32, %arg1: i32) -> (i32, i32, i32) {
    %c0_i32 = arith.constant 0 : i32
    %c0_i32_0 = arith.constant 0 : i32
    %c0_i32_1 = arith.constant 0 : i32
    return %arg1, %c0_i32, %c0_i32_0 : i32, i32, i32
  }
  func.func @transform_2(%arg0: i32, %arg1: i32) -> (i32, i32) {
    %c0_i32 = arith.constant 0 : i32
    %c0_i32_0 = arith.constant 0 : i32
    %c0_i32_1 = arith.constant 0 : i32
    return %c0_i32, %c0_i32_0 : i32, i32
  }
  func.func @transform_3(%arg0: i32, %arg1: i32) -> (i32, i32) {
    %c0_i32 = arith.constant 0 : i32
    %c0_i32_0 = arith.constant 0 : i32
    %c0_i32_1 = arith.constant 0 : i32
    return %c0_i32, %c0_i32_0 : i32, i32
  }
  func.func @transform_4(%arg0: i32, %arg1: i32) -> (i32, i32) {
    %c0_i32 = arith.constant 0 : i32
    %c0_i32_0 = arith.constant 0 : i32
    %c0_i32_1 = arith.constant 0 : i32
    return %c0_i32, %c0_i32_0 : i32, i32
  }
  func.func @transform_5(%arg0: i32, %arg1: i32) -> (i32, i32) {
    %c0_i32 = arith.constant 0 : i32
    %c0_i32_0 = arith.constant 0 : i32
    %c0_i32_1 = arith.constant 0 : i32
    return %c0_i32, %c0_i32_0 : i32, i32
  }
  func.func @transform_6(%arg0: i32, %arg1: i32) -> (i32, i32) {
    %c0_i32 = arith.constant 0 : i32
    %c0_i32_0 = arith.constant 0 : i32
    %c0_i32_1 = arith.constant 0 : i32
    return %c0_i32, %c0_i32_0 : i32, i32
  }
  func.func @transform_7(%arg0: i32, %arg1: i32) -> i32 {
    %c0_i32 = arith.constant 0 : i32
    %c0_i32_0 = arith.constant 0 : i32
    return %c0_i32 : i32
  }
  func.func @transform_8(%arg0: i32, %arg1: i32) -> (i32, i32, i32) {
    %c2_i32 = arith.constant 2 : i32
    %0 = arith.muli %arg0, %c2_i32 : i32
    %1 = arith.addi %0, %arg1 : i32
    %c0_i32 = arith.constant 0 : i32
    %c0_i32_0 = arith.constant 0 : i32
    %c0_i32_1 = arith.constant 0 : i32
    return %1, %c0_i32, %c0_i32_0 : i32, i32, i32
  }
}

</mosaic_0001>

<bundles_post_ra>
// kernel: tpu_custom_call.1
= control target key start
LH: loop header
LB: loop body
LE: loop exit
PB: predicated region body
PF: predicated region fallthrough
CT: control target
= control target key end

     0   :  { %s5310_s0 = inlined_call_operand.hbm [shape: f32[4,1,552], index: 0, kind: input, shape index: {}]   ;;  %s5311_s1 = inlined_call_operand.hbm [shape: f32[2,1,336], index: 1, kind: input, shape index: {}]   ;;  %s5312_s2 = inlined_call_operand.vmem [shape: f32[64,81], index: 2, kind: input, shape index: {}]   ;;  %s5313_s3 = inlined_call_operand.vmem [shape: f32[64,1], index: 3, kind: input, shape index: {}]   ;;  %s5314_s4 = inlined_call_operand.vmem [shape: f32[32,64], index: 4, kind: input, shape index: {}]   ;;  %s5315_s5 = inlined_call_operand.vmem [shape: f32[32,1], index: 5, kind: input, shape index: {}]   ;;  %s5316_s6 = inlined_call_operand.hbm [shape: f32[25,32], index: 6, kind: input, shape index: {}]   ;;  %s5317_s7 = inlined_call_operand.<no memory space> [shape: f32[1], index: 7, kind: input, shape index: {}]   ;;  %s5318_s8 = inlined_call_operand.hbm [shape: f32[4,1,192], index: 8, kind: output, shape index: {}]  }
   0x1   :  { %5419 = sst [smem:[#allocation51_spill]] %s5316_s6 }
   0x2   :  { %5420 = sst [smem:[#allocation52_spill]] %s5318_s8 }
   0x3   :  { %13 = sst [smem:[#allocation2]] %s5317_s7 }
   0x4   :  { %14 = vsyncpa [#allocation4], 0 }
   0x5   :  { %16 = vsyncpa [#allocation4 + $0x1], 0 }
   0x6   :  { %17 = vsyncpa [#allocation7], 0 }
   0x7   :  { %19 = vsyncpa [#allocation7 + $0x1], 0 }
   0x8   :  { %20 = vsyncpa [#allocation5], 0 }
   0x9   :  { %22 = vsyncpa [#allocation5 + $0x1], 0  ;;  %s3249_s29 = smov 0   ;;  %s3251_s30 = smov 0  }
   0xa   :  { %s3253_s9 = smov 0   ;;  %s3255_s10 = smov 0  }
   0xb   :  { %s3257_s11 = smov 0   ;;  %s3259_s12 = smov 0  }
   0xc   :  { %s3261_s13 = smov 0   ;;  %s3263_s7 = smov 0  }
   0xd   :  { %s3265_s14 = smov 0   ;;  %s3267_s15 = smov 0  }
   0xe   :  { %s3269_s16 = smov 0  }
   0xf LB: > { %5421 = sst [smem:[#allocation14_spill]] %s3112_s10  ;;  %s3305_s17 = sadd.s32 4294967295, %s3140_s16   ;;  %s3140_s16 = sphi %s3269_s16, %s28_s16   ;;  %s3136_s15 = sphi %s3267_s15, %s5604_s15   ;;  %s3132_s14 = sphi %s3265_s14, %s5611_s14   ;;  %s3128_s7 = sphi %s3263_s7, %s5602_s7   ;;  %s3124_s13 = sphi %s3261_s13, %s5610_s13   ;;  %s3120_s12 = sphi %s3259_s12, %s5601_s12   ;;  %s3116_s11 = sphi %s3257_s11, %s5609_s11   ;;  %s3112_s10 = sphi %s3255_s10, %s5608_s10   ;;  %s3108_s9 = sphi %s3253_s9, %s5607_s9   ;;  %s3104_s30 = sphi %s3251_s30, %s5606_s30   ;;  %s3100_s29 = sphi %s3249_s29, %s5605_s29  }
  0x10   : > { %5422 = sst [smem:[#allocation15_spill]] %s3120_s12  ;;  %p2321_p0 = scmp.ge.s32.totalorder %s3140_s16, 1 }
  0x11   : > { %5423 = sst [smem:[#allocation16_spill]] %s3124_s13  ;;  %p65_p1 = scmp.eq.s32.totalorder %s3305_s17, 0 }
  0x12   : > { %5424 = sst [smem:[#allocation17_spill]] %s3136_s15  ;;  %p257_p2 = scmp.lt.s32.totalorder %s3140_s16, 5 }
  0x13   : > { %s5425_s6 = sld [smem:[#allocation51_spill]]  ;;  %s3142_s22 = smov [#allocation8]  }
  0x14   : > { %p3313_p3 = pnand %p2321_p0, %p257_p2  ;;  %s282_s23 = sshll.u32 %s3142_s22, 4  ;;  %s283_s23 = int_to_ptr.vmem [resolvable:$true] %s282_s23 }
  0x15   : > { %s3143_s24 = smov 128   ;;  %s3144_s25 = smov 8  }
  0x16   : > { %p2400_p4 = pneg %p3313_p3  ;;  %s2316_s26 = sadd.s32 4294967294, %s3140_s16  }
  0x17   : > { %s37_s27 = sadd.s32 1, %s3132_s14  ;;  %s40_s28 = sadd.s32 1, %s3136_s15 }
  0x18   : > { %p2401_p5 = pnand %p2400_p4, %p65_p1  ;;  %p38_p6 = scmp.ge.s32.totalorder %s37_s27, 2 }
  0x19   : > { %s280_s20 = sshll.u32 %s5425_s6, 4  ;;  %s2317_s18 = sshll.u32 %s3136_s15, 1  ;;  %s281_s20 = int_to_ptr.hbm [resolvable:$true] %s280_s20 }
  0x1a   : > { %2403 = dma.hbm_to_vmem [thread:$0]  (!%p2401_p5), %s281_s20, 512, %s283_s23, [#allocation7], %s3143_s24, %s3143_s24, %s3144_s25  }
  0x1b   : > { %s45_s19 = sadd.s32 %s3132_s14, %s2317_s18  ;;  %s51_s22 = sadd.s32 1, %s3120_s12 }
  0x1c   : > { %s5613_s27 = smov (%p38_p6, %s37_s27), 0  ;;  %s5615_s28 = smov (!%p38_p6, %s40_s28), %s3136_s15 }
  0x1d   : > { %5427 = sst [smem:[#allocation18_spill]] %s5613_s27  ;;  %p58_p7 = scmp.ne.s32.totalorder %s3120_s12, %s3116_s11 }
  0x1e   : > { %p59_p8 = scmp.eq.s32.totalorder %s3140_s16, 0  ;;  %p42_p9 = scmp.ge.s32.totalorder %s5615_s28, 2 }
  0x1f   : > { %p64_p10 = scmp.ne.s32.totalorder %s3116_s11, %s3112_s10  ;;  %s74_s23 = ssub.s32 %s3132_s14, %s5613_s27 }
  0x20   : > { %p3340_p11 = por %p59_p8, %p58_p7  ;;  %s5617_s28 = smov (%p42_p9, %s5615_s28), 0 }
  0x21   : > { %5429 = sst [smem:[#allocation19_spill]] %s5617_s28  ;;  %p3353_p12 = por %p65_p1, %p64_p10 }
  0x22   : > { %p3357_p13 = scmp.eq.s32.totalorder %s74_s23, 0  ;;  %s2318_s18 = sshll.u32 %s5617_s28, 1 }
  0x23   : > { %p244_p0 = scmp.eq.s32.totalorder %s3305_s17, 3  ;;  %s47_s6 = sadd.s32 %s2318_s18, %s5613_s27 }
  0x24   : > { %p250_p2 = scmp.eq.s32.totalorder %s2316_s26, 3  ;;  %s48_s15 = ssub.s32 %s45_s19, %s47_s6 }
  0x25   : > { %p3367_p4 = por %p244_p0, %p58_p7  ;;  %p49_p5 = scmp.eq.s32.totalorder %s48_s15, 0 }
  0x26   : > { %p3374_p6 = por %p250_p2, %p64_p10  ;;  %p2416_p9 = scmp.lt.s32.totalorder %s3140_s16, 4 }
  0x27   : > { %s5432_s8 = scalar_select %p3367_p4, 1, 0 }
  0x28   : > { %s5434_s13 = scalar_select %p3374_p6, 1, 0 }
  0x29   : > { %5433 = sst [smem:[#allocation20_spill]] %s5432_s8  ;;  %s299_s23 = sand.u32 1, %s3120_s12  }
  0x2a   : > { %5435 = sst [smem:[#allocation21_spill]] %s5434_s13  ;;  %s2384_s26 = smul.u32 5, %s299_s23 }
  0x2b   : > { %s3381_s6 = scalar_select %p49_p5, %s3120_s12, %s51_s22  }
  0x2c   : > { %s2385_s15 = smul.u32 5, %s45_s19  ;;  %p2405_p7 = pnand %p2416_p9, %p3340_p11 }
  0x2d   : > { %5436 = sst [smem:[#allocation22_spill]] %s3381_s6  ;;  %s303_s13 = scalar_lea.vmem [#allocation3], %s2384_s26 }
  0x2e   : > { %s309_s27 = scalar_lea.hbm %s5310_s0, %s2385_s15  ;;  %s313_s10 = sshll.u32 %s303_s13, 4  ;;  %s314_s10 = int_to_ptr.vmem [resolvable:$true] %s313_s10 }
  0x2f   : > { %s311_s8 = sshll.u32 %s309_s27, 4  ;;  %s300_s22 = scalar_lea.sflag [#allocation4], %s299_s23  ;;  %s312_s8 = int_to_ptr.hbm [resolvable:$true] %s311_s8 }
  0x30   : > { %2407 = dma.hbm_to_vmem [thread:$0]  (!%p2405_p7), %s312_s8, 80, %s314_s10, %s300_s22  }
  0x31   : > { %s77_s6 = sadd.s32 1, %s3108_s9  ;;  %p84_p10 = scmp.ne.s32.totalorder %s3108_s9, %s3104_s30 }
  0x32   : > { %s3394_s19 = scalar_select %p3357_p13, %s3108_s9, %s77_s6  }
  0x33   : > { %p90_p11 = scmp.ne.s32.totalorder %s3104_s30, %s3100_s29  ;;  %s320_s20 = sand.u32 1, %s3140_s16  }
  0x34   : > { %s322_s12 = sand.u32 1, %s3108_s9   ;;  %p86_p0 = por %p84_p10, %p59_p8 }
  0x35   : > { %p3406_p2 = por %p90_p11, %p65_p1  ;;  %s2386_s13 = smul.u32 3, %s322_s12 }
  0x36   : > { %s2387_s27 = smul.u32 3, %s3132_s14  ;;  %p2408_p5 = pnand %p2416_p9, %p86_p0 }
  0x37   : > { %s324_s23 = scalar_lea.vmem [#allocation6], %s2386_s13  ;;  %s321_s26 = scalar_lea.sflag [#allocation7], %s320_s20 }
  0x38   : > { %s328_s25 = scalar_lea.hbm %s5311_s1, %s2387_s27  ;;  %s332_s6 = sshll.u32 %s324_s23, 4  ;;  %s333_s6 = int_to_ptr.vmem [resolvable:$true] %s332_s6 }
  0x39   : > { %s330_s29 = sshll.u32 %s328_s25, 4  ;;  %341 = sbr.rel (%p3313_p3) target bundleno = 1362 (0x552), region = 52  ;;  %s331_s29 = int_to_ptr.hbm [resolvable:$true] %s330_s29 }
  0x3a   : > { %2410 = dma.hbm_to_vmem [thread:$0]  (!%p2408_p5), %s331_s29, 48, %s333_s6, %s321_s26  }
  0x3e   : > { %s3419_s12 = sand.u32 1, %s3116_s11  }
  0x3f   : > { %s2388_s15 = smul.u32 5, %s3419_s12  ;;  %s344_s18 = scalar_lea.sflag [#allocation4], %s3419_s12 }
  0x41   : > { %s3423_s22 = scalar_lea.vmem [#allocation3], %s2388_s15 }
  0x42   : > { %3083 = dma.done.wait (%p3353_p12), %s344_s18, 80  }
  0x43   : > { %3085 = vsyncadd (%p3353_p12), %s344_s18, 4294967216  ;;  %s353_s21 = sand.u32 1, %s3305_s17   ;;  %s355_s20 = sand.u32 1, %s3104_s30  }
  0x44   : > { %s3431_s13 = smul.u32 3, %s355_s20  ;;  %s354_s27 = scalar_lea.sflag [#allocation7], %s353_s21 }
  0x45   : > { %3087 = dma.done.wait (%p3406_p2), %s354_s27, 48  }
  0x46   : > { %3089 = vsyncadd (%p3406_p2), %s354_s27, 4294967248 }
  0x47   : > { %3091 = dma.done.wait (%p65_p1), [#allocation7], 512  }
  0x48   : > { %3093 = vsyncadd (%p65_p1), [#allocation7], 4294966784  ;;  %v405_v0 = vld [vmem:[%s3423_s22] sm:$0x1f]  ;;  %s5349_s24 = smov 127   ;;  %s5328_s17 = smov 103  }
  0x49   : > { %v3443_v1 = vperm.slane %v405_v0, 2  ;;  %v3445_v2 = vperm.slane %v405_v0, 3  ;;  %v3447_v3 = vperm.slane %v405_v0, 1  ;;  %v3461_v6 = vperm.slane %v405_v0, 0  ;;  %s5334_s28 = smov 104   ;;  %s5330_s10 = smov 102  }
  0x4a   : > { %s3149_s25 = smov 105   ;;  %s5336_s23 = smov 101   ;;  %vm5363_vm0 = vcmask 1039360   ;;  %vm5367_vm1 = vcmask 1031168   ;;  %vm593_vm2 = vcmask 1040384   ;;  %vm597_vm3 = vcmask 1041408  }
  0x4b   : > { %5438 = vst [vmem:[#allocation23_spill] sm:$0xff] %v3443_v1  ;;  %v3451_v4 = vpack.i.bf16 %v3445_v2, %v3443_v1  ;;  %v3455_v5 = vpack.i.bf16 %v3443_v1, %v3447_v3  ;;  %v3467_v7 = vpack.i.bf16 %v3447_v3, %v3461_v6  ;;  %s5360_s6 = smov 126   ;;  %v2621_v8 = vpack.i.bf16 %v3445_v2, %v3461_v6  ;;  %s5342_s29 = smov 125  }
  0x4c   : > { %s5332_s26 = smov 124   ;;  %s5340_s15 = smov 100   ;;  %v2771_v12 = vpack.i.bf16 %v3461_v6, %v3445_v2  ;;  %vm5346_vm4 = vcmask 859136   ;;  %vm5386_vm5 = vcmask 834560   ;;  %vm5384_vm6 = vcmask 842752  }
  0x4d   : > { %2587 = vrot.lane.b32.xlu2 %v3451_v4, %s5349_s24  ;;  %2577 = vrot.lane.b32.xlu1 %v3455_v5, %s5328_s17  ;;  %s3155_s18 = smov 99   ;;  %s3156_s21 = smov 83   ;;  %vm5404_vm7 = vcmask 850944   ;;  %vm601_vm8 = vcmask 1042432   ;;  %vm5376_vm9 = vcmask 1022976   ;;  %vm5338_vm10 = vcmask 826368  }
  0x4e   : > { %2567 = vrot.lane.b32.xlu0 %v3455_v5, %s5334_s28  ;;  %s3157_s20 = smov 123   ;;  %s5339_s27 = smov 106   ;;  %vm605_vm11 = vcmask 1043456   ;;  %vm5344_vm12 = vcmask 809984   ;;  %vm821_vm13 = vcmask 678912   ;;  %vm5345_vm14 = vcmask 818176  }
  0x4f   : > { %vm609_vm15 = vcmask 1044480   ;;  %s5410_s8 = smov 51  }
  0x55   : > { %2592 = vrot.lane.b32.xlu2 %v3455_v5, %s5330_s10  ;;  %2582 = vrot.lane.b32.xlu1 %v3467_v7, %s5349_s24  ;;  %s5398_s24 = smov 5  }
  0x56   : > { %2572 = vrot.lane.b32.xlu0 %v3455_v5, %s3149_s25 }
  0x5d   : > { %2607 = vrot.lane.b32.xlu2 %v3455_v5, %s5336_s23  ;;  %2602 = vrot.lane.b32.xlu1 %v3451_v4, %s5360_s6 }
  0x5e   : > { %2597 = vrot.lane.b32.xlu0 %v3467_v7, %s5360_s6  ;;  %s5397_s6 = smov 120  }
  0x65   : > { %2622 = vrot.lane.b32.xlu2 %v2621_v8, %s5334_s28  ;;  %2617 = vrot.lane.b32.xlu1 %v3451_v4, %s5342_s29  ;;  %s3163_s28 = smov 108  }
  0x66   : > { %2612 = vrot.lane.b32.xlu0 %v3467_v7, %s5342_s29  ;;  %s3179_s29 = smov 57  }
  0x6d   : > { %2637 = vrot.lane.b32.xlu2 %v3467_v7, %s5332_s26  ;;  %2632 = vrot.lane.b32.xlu1 %v2621_v8, %s3149_s25  ;;  %s3159_s25 = smov 107  }
  0x6e   : > { %2627 = vrot.lane.b32.xlu0 %v3455_v5, %s5340_s15 }
  0x75   : > { %2652 = vrot.lane.b32.xlu2 %v3455_v5, %s3155_s18  ;;  %2647 = vrot.lane.b32.xlu1 %v2621_v8, %s5328_s17  ;;  %s3160_s17 = smov 85  }
  0x76   : > { %2642 = vrot.lane.b32.xlu0 %v3451_v4, %s5332_s26  ;;  %s3162_s26 = smov 109  }
  0x7d   : > { %2667 = vrot.lane.b32.xlu2 %v3455_v5, %s3156_s21  ;;  %2662 = vrot.lane.b32.xlu1 %v2621_v8, %s5330_s10  ;;  %s3161_s10 = smov 84  }
  0x7e   : > { %2657 = vrot.lane.b32.xlu0 %v3455_v5, %s3157_s20 }
  0x85   : > { %717 = vrot.lane.b32.xlu2 %v3447_v3, %s5339_s27  ;;  %2677 = vrot.lane.b32.xlu1 %v3455_v5, %s3159_s25 }
  0x86   : > { %2672 = vrot.lane.b32.xlu0 %v2621_v8, %s5336_s23  ;;  %s3165_s23 = smov 111  }
  0x8d   : > { %2687 = vrot.lane.b32.xlu2 %v3451_v4, %s3160_s17  ;;  %2682 = vrot.lane.b32.xlu1 %v3467_v7, %s3160_s17  ;;  %s3164_s17 = smov 87  }
  0x8e   : > { %719 = vrot.lane.b32.xlu0 %v3443_v1, %s5339_s27 }
  0x95   : > { %2702 = vrot.lane.b32.xlu2 %v3467_v7, %s3161_s10  ;;  %2697 = vrot.lane.b32.xlu1 %v3451_v4, %s3162_s26 }
  0x96   : > { %2692 = vrot.lane.b32.xlu0 %v3467_v7, %s3162_s26  ;;  %s3166_s26 = smov 110  }
  0x9d   : > { %2717 = vrot.lane.b32.xlu2 %v3451_v4, %s3163_s28  ;;  %2712 = vrot.lane.b32.xlu1 %v3467_v7, %s3163_s28  ;;  %s3167_s28 = smov 86  }
  0x9e   : > { %2707 = vrot.lane.b32.xlu0 %v3451_v4, %s3161_s10  ;;  %s3168_s10 = smov 63  }
  0xa5   : > { %2732 = vrot.lane.b32.xlu2 %v2621_v8, %s3156_s21  ;;  %2727 = vrot.lane.b32.xlu1 %v3451_v4, %s3164_s17  ;;  %s3171_s21 = smov 62  }
  0xa6   : > { %2722 = vrot.lane.b32.xlu0 %v3467_v7, %s3164_s17  ;;  %s3174_s17 = smov 60  }
  0xa7   : > { %v3516_v9 = vpop.permute.xlu2 %2587 }
  0xa8   : > { %v5351_v19 = vunpack.i.h.bf16 %v3516_v9  ;;  %v3545_v20 = vunpack.i.l.bf16 %v3516_v9 }
  0xaa   : > { %v870_v21 = vsel %vm5363_vm0, %v3545_v20, %v5351_v19  ;;  %v3588_v34 = vsel %vm593_vm2, %v3443_v1, %v3545_v20 }
  0xab   : > { %v903_v27 = vsel %vm593_vm2, %v3443_v1, %v870_v21 }
  0xad   : > { %2742 = vrot.lane.b32.xlu2 %v2621_v8, %s3159_s25  ;;  %646 = vrot.lane.b32.xlu1 %v3443_v1, %s3165_s23  ;;  %s3173_s25 = smov 59  }
  0xae   : > { %2737 = vrot.lane.b32.xlu0 %v3467_v7, %s3165_s23  ;;  %s3169_s23 = smov 64  }
  0xaf   : > { %v2593_v10 = vpop.permute.xlu2 %2592 }
  0xb0   : > { %v3590_v35 = vunpack.i.h.bf16 %v2593_v10  ;;  %v3592_v36 = vunpack.i.l.bf16 %v2593_v10 }
  0xb2   : > { %5440 = vst [vmem:[#allocation25_spill] sm:$0xff] %v3590_v35  ;;  %v3650_v56 = vsel %vm5386_vm5, %v3592_v36, %v3590_v35 }
  0xb3   : > { %5445 = vst [vmem:[#allocation30_spill] sm:$0xff] %v3650_v56 }
  0xb5   : > { %2757 = vrot.lane.b32.xlu2 %v3467_v7, %s3166_s26  ;;  %2752 = vrot.lane.b32.xlu1 %v3451_v4, %s3167_s28 }
  0xb6   : > { %2747 = vrot.lane.b32.xlu0 %v3467_v7, %s3167_s28  ;;  %s3176_s28 = smov 56  }
  0xb7   : > { %v3523_v11 = vpop.permute.xlu2 %2607 }
  0xb8   : > { %v3613_v45 = vunpack.i.h.bf16 %v3523_v11  ;;  %v3624_v48 = vunpack.i.l.bf16 %v3523_v11 }
  0xba   : > { %5442 = vst [vmem:[#allocation27_spill] sm:$0xff] %v3613_v45  ;;  %v3663_v58 = vsel %vm5338_vm10, %v3624_v48, %v3613_v45  ;;  %vm613_vm10 = vcmask 1045504  }
  0xbb   : > { %5446 = vst [vmem:[#allocation31_spill] sm:$0xff] %v3663_v58 }
  0xbd   : > { %2772 = vrot.lane.b32.xlu2 %v2771_v12, %s5340_s15  ;;  %2767 = vrot.lane.b32.xlu1 %v2621_v8, %s5339_s27  ;;  %s3177_s27 = smov 81   ;;  %s5400_s15 = smov 80  }
  0xbe   : > { %2762 = vrot.lane.b32.xlu0 %v3451_v4, %s3166_s26  ;;  %s3175_s26 = smov 82  }
  0xbf   : > { %v2578_v13 = vpop.permute.xlu1 %2577  ;;  %v3530_v14 = vpop.permute.xlu2 %2622 }
  0xc0   : > { %v2568_v15 = vpop.permute.xlu0 %2567  ;;  %v3602_v40 = vunpack.i.h.bf16 %v2578_v13  ;;  %v3604_v41 = vunpack.i.l.bf16 %v2578_v13 }
  0xc1   : > { %v3575_v32 = vunpack.i.h.bf16 %v2568_v15  ;;  %v3577_v33 = vunpack.i.l.bf16 %v2568_v15 }
  0xc2   : > { %5441 = vst [vmem:[#allocation26_spill] sm:$0xff] %v3602_v40  ;;  %v3643_v54 = vsel %vm5384_vm6, %v3604_v41, %v3602_v40 }
  0xc3   : > { %5439 = vst [vmem:[#allocation24_spill] sm:$0xff] %v3575_v32  ;;  %v3618_v46 = vsel %vm5404_vm7, %v3577_v33, %v3575_v32 }
  0xc4   : > { %5443 = vst [vmem:[#allocation28_spill] sm:$0xff] %v3618_v46 }
  0xc5   : > { %2787 = vrot.lane.b32.xlu2 %v2771_v12, %s3155_s18  ;;  %2782 = vrot.lane.b32.xlu1 %v3455_v5, %s3168_s10  ;;  %s3170_s18 = smov 61   ;;  %5444 = vst [vmem:[#allocation29_spill] sm:$0xff] %v3643_v54 }
  0xc6   : > { %2777 = vrot.lane.b32.xlu0 %v3455_v5, %s3169_s23 }
  0xc7   : > { %v3537_v16 = vpop.permute.xlu2 %2637  ;;  %v3539_v17 = vpop.permute.xlu1 %2582 }
  0xc8   : > { %v3541_v18 = vpop.permute.xlu0 %2572 }
  0xc9   : > { %v2575_v29 = vunpack.i.h.bf16 %v3541_v18  ;;  %v3572_v30 = vunpack.i.l.bf16 %v3541_v18 }
  0xcb   : > { %v740_v37 = vsel %vm5346_vm4, %v3572_v30, %v2575_v29  ;;  %v991_v47 = vsel %vm593_vm2, %v3572_v30, %v3577_v33 }
  0xcc   : > { %v847_v49 = vsel %vm593_vm2, %v740_v37, %v3618_v46  ;;  %v992_v55 = vsel %vm597_vm3, %v991_v47, %v3604_v41 }
  0xcd   : > { %2802 = vrot.lane.b32.xlu2 %v3455_v5, %s3170_s18  ;;  %2797 = vrot.lane.b32.xlu1 %v2771_v12, %s3157_s20  ;;  %s3172_s20 = smov 58   ;;  %v3654_v57 = vsel %vm597_vm3, %v847_v49, %v3643_v54  ;;  %v993_v62 = vsel %vm601_vm8, %v992_v55, %v3592_v36  ;;  %v2624_v54 = vunpack.i.l.bf16 %v3530_v14 }
  0xce   : > { %2792 = vrot.lane.b32.xlu0 %v3455_v5, %s3171_s21  ;;  %v928_v8 = vsel %vm601_vm8, %v3654_v57, %v3650_v56  ;;  %v994_v15 = vsel %vm605_vm11, %v993_v62, %v3624_v48 }
  0xcf   : > { %v2653_v22 = vpop.permute.xlu2 %2652  ;;  %v3556_v23 = vpop.permute.xlu1 %2602 }
  0xd0   : > { %v3558_v24 = vpop.permute.xlu0 %2597  ;;  %v5348_v25 = vunpack.i.h.bf16 %v3556_v23  ;;  %v3562_v26 = vunpack.i.l.bf16 %v3556_v23  ;;  %v3667_v59 = vunpack.i.h.bf16 %v2653_v22  ;;  %v3669_v60 = vunpack.i.l.bf16 %v2653_v22 }
  0xd2   : > { %v875_v28 = vsel %vm5367_vm1, %v3562_v26, %v5348_v25  ;;  %v600_v51 = vsel %vm597_vm3, %v3588_v34, %v3562_v26  ;;  %5447 = vst [vmem:[#allocation32_spill] sm:$0xff] %v3667_v59  ;;  %v3701_v22 = vsel %vm5344_vm12, %v3669_v60, %v3667_v59  ;;  %vm617_vm12 = vcmask 1046528  }
  0xd3   : > { %v905_v31 = vsel %vm597_vm3, %v903_v27, %v875_v28  ;;  %5448 = vst [vmem:[#allocation33_spill] sm:$0xff] %v3669_v60 }
  0xd4   : > { %5450 = vst [vmem:[#allocation35_spill] sm:$0xff] %v3701_v22 }
  0xd5   : > { %2817 = vrot.lane.b32.xlu2 %v3455_v5, %s3172_s20  ;;  %2812 = vrot.lane.b32.xlu1 %v3455_v5, %s3173_s25 }
  0xd6   : > { %2807 = vrot.lane.b32.xlu0 %v3455_v5, %s3174_s17 }
  0xd7   : > { %v3598_v38 = vpop.permute.xlu2 %2667  ;;  %v3600_v39 = vpop.permute.xlu1 %2617 }
  0xd8   : > { %v3606_v42 = vpop.permute.xlu0 %2612  ;;  %v5347_v43 = vunpack.i.h.bf16 %v3600_v39  ;;  %v3610_v44 = vunpack.i.l.bf16 %v3600_v39  ;;  %v5355_v12 = vunpack.i.h.bf16 %v3598_v38  ;;  %v3687_v13 = vunpack.i.l.bf16 %v3598_v38 }
  0xda   : > { %v880_v50 = vsel %vm5376_vm9, %v3610_v44, %v5347_v43  ;;  %v604_v53 = vsel %vm601_vm8, %v600_v51, %v3610_v44 }
  0xdb   : > { %v3636_v52 = vsel %vm601_vm8, %v905_v31, %v880_v50  ;;  %v3712_v31 = vsel %vm605_vm11, %v928_v8, %v3663_v58 }
  0xdd   : > { %2822 = vrot.lane.b32.xlu2 %v3455_v5, %s3175_s26  ;;  %1313 = vrot.lane.b32.xlu1 %v3443_v1, %s3176_s28 }
  0xde   : > { %1311 = vrot.lane.b32.xlu0 %v3447_v3, %s3176_s28 }
  0xdf   : > { %v3671_v61 = vpop.permute.xlu2 %717  ;;  %v3675_v63 = vpop.permute.xlu1 %2632 }
  0xe0   : > { %v2628_v0 = vpop.permute.xlu0 %2627  ;;  %v5353_v4 = vunpack.i.h.bf16 %v3675_v63 }
  0xe1   : > { %v3681_v10 = vunpack.i.h.bf16 %v2628_v0  ;;  %v3683_v11 = vunpack.i.l.bf16 %v2628_v0 }
  0xe2   : > { %v3696_v21 = vsel %vm5346_vm4, %v2575_v29, %v5353_v4  ;;  %v3725_v29 = vsel %vm821_vm13, %v3687_v13, %v5355_v12  ;;  %vm5375_vm4 = vcmask 1014784   ;;  %v2584_v4 = vunpack.i.l.bf16 %v3539_v17 }
  0xe3   : > { %5449 = vst [vmem:[#allocation34_spill] sm:$0xff] %v3681_v10  ;;  %v3706_v27 = vsel %vm5345_vm14, %v3683_v11, %v3681_v10  ;;  %v995_v28 = vsel %vm609_vm15, %v994_v15, %v3683_v11  ;;  %vm5368_vm14 = vcmask 695296   ;;  %v2600_v12 = vunpack.i.h.bf16 %v3558_v24 }
  0xe4   : > { %5451 = vst [vmem:[#allocation36_spill] sm:$0xff] %v3706_v27  ;;  %v996_v18 = vsel %vm609_vm15, %v3712_v31, %v3706_v27  ;;  %v999_v37 = vsel %vm613_vm10, %v995_v28, %v3669_v60 }
  0xe5   : > { %2832 = vrot.lane.b32.xlu1 %v3455_v5, %s3177_s27  ;;  %2837 = vrot.lane.b32.xlu2 %v3455_v5, %s5400_s15  ;;  %v1000_v47 = vsel %vm613_vm10, %v996_v18, %v3701_v22  ;;  %v1003_v8 = vsel %vm617_vm12, %v999_v37, %v3687_v13  ;;  %s3185_s15 = smov 98  }
  0xe6   : > { %2827 = vrot.lane.b32.xlu0 %v3455_v5, %s3179_s29  ;;  %v1004_v15 = vsel %vm617_vm12, %v1000_v47, %v3725_v29 }
  0xe7   : > { %v3733_v49 = vpop.permute.xlu2 %2687  ;;  %v3735_v50 = vpop.permute.xlu1 %2647  ;;  %v2841_v25 = vpack.i.bf16 %v1004_v15, %v1003_v8  ;;  %v5362_v8 = vunpack.i.h.bf16 %v3530_v14  ;;  %v2639_v15 = vunpack.i.l.bf16 %v3537_v16 }
  0xe8   : > { %v3738_v51 = vunpack.i.h.bf16 %v3733_v49  ;;  %v5352_v55 = vunpack.i.l.bf16 %v3733_v49  ;;  %v3741_v62 = vpop.permute.xlu0 %2642  ;;  %v5364_v22 = vunpack.i.h.bf16 %v3735_v50  ;;  %v2649_v46 = vunpack.i.l.bf16 %v3735_v50 }
  0xe9   : > { %5452 = vst [vmem:[#allocation37_spill] sm:$0xff] %v3741_v62  ;;  %v5354_v5 = vunpack.i.h.bf16 %v3741_v62  ;;  %v2644_v0 = vunpack.i.l.bf16 %v3741_v62 }
  0xea   : > { %v3753_v28 = vsel %vm5368_vm14, %v5352_v55, %v3738_v51  ;;  %v2585_v55 = vunpack.i.h.bf16 %v3539_v17  ;;  %vm708_vm14 = vcmask 875520  }
  0xeb   : > { %v949_v18 = vsel %vm5375_vm4, %v2644_v0, %v5354_v5  ;;  %v3763_v37 = vsel %vm605_vm11, %v604_v53, %v2644_v0  ;;  %v2640_v53 = vunpack.i.h.bf16 %v3537_v16 }
  0xec   : > { %v3760_v43 = vsel %vm605_vm11, %v3636_v52, %v949_v18  ;;  %5454 = vst [vmem:[#allocation39_spill] sm:$0xff] %v3763_v37  ;;  %v2599_v18 = vunpack.i.l.bf16 %v3558_v24  ;;  %v2614_v37 = vunpack.i.l.bf16 %v3606_v42  ;;  %v420_v27 = vsel %vm5363_vm0, %v2584_v4, %v2585_v55 }
  0xed   : > { %5453 = vst [vmem:[#allocation38_spill] sm:$0xff] %v3760_v43  ;;  %v747_v24 = vsel %vm5404_vm7, %v3575_v32, %v5362_v8  ;;  %v456_v56 = vsel %vm5375_vm4, %v2639_v15, %v2640_v53  ;;  %v421_v16 = vsel %vm5363_vm0, %v2585_v55, %v3545_v20  ;;  %v433_v20 = vsel %vm5367_vm1, %v2600_v12, %v3562_v26 }
  0xee   : > { %2842 = vrot.lane.b32.xlu0 %v2841_v25, %s5398_s24  ;;  %v2615_v25 = vunpack.i.h.bf16 %v3606_v42  ;;  %v432_v58 = vsel %vm5367_vm1, %v2599_v18, %v2600_v12  ;;  %v3794_v42 = vsel %vm593_vm2, %v3461_v6, %v420_v27  ;;  %v751_v18 = vsel %vm5384_vm6, %v3602_v40, %v5364_v22 }
  0xef   : > { %v3766_v47 = vpop.permute.xlu2 %2702  ;;  %v3768_v19 = vpop.permute.xlu1 %2662  ;;  %v598_v17 = vsel %vm597_vm3, %v3794_v42, %v432_v58  ;;  %vm5377_vm0 = vcmask 1006592   ;;  %vm5457_vm1 = vcmask 826368  }
  0xf0   : > { %v2658_v5 = vpop.permute.xlu0 %2657  ;;  %v444_v4 = vsel %vm5376_vm9, %v2614_v37, %v2615_v25  ;;  %v5455_v6 = vunpack.i.h.bf16 %v3768_v19  ;;  %v848_v37 = vsel %vm593_vm2, %v3696_v21, %v747_v24  ;;  %v445_v21 = vsel %vm5376_vm9, %v2615_v25, %v3610_v44 }
  0xf1   : > { %v3817_v22 = vunpack.i.h.bf16 %v2658_v5  ;;  %v3819_v40 = vunpack.i.l.bf16 %v2658_v5  ;;  %v3823_v32 = vsel %vm601_vm8, %v598_v17, %v444_v4  ;;  %v3826_v26 = vsel %vm597_vm3, %v848_v37, %v751_v18 }
  0xf2   : > { %v892_v27 = vsel %vm5386_vm5, %v3590_v35, %v5455_v6  ;;  %v3842_v24 = vsel %vm593_vm2, %v3447_v3, %v421_v16  ;;  %v457_v4 = vsel %vm5375_vm4, %v2640_v53, %v2644_v0  ;;  %vm693_vm4 = vcmask 883712  }
  0xf3   : > { %5456 = vst [vmem:[#allocation40_spill] sm:$0xff] %v3819_v40  ;;  %v929_v5 = vsel %vm601_vm8, %v3826_v26, %v892_v27  ;;  %v599_v44 = vsel %vm597_vm3, %v3842_v24, %v433_v20  ;;  %v469_v25 = vsel %vm5377_vm0, %v3819_v40, %v3817_v22  ;;  %vm5461_vm9 = vcmask 859136  }
  0xf4   : > { %v3863_v0 = vsel %vm601_vm8, %v599_v44, %v445_v21  ;;  %vm678_vm0 = vcmask 891904  }
  0xf6   : > { %2857 = vrot.lane.b32.xlu0 %v3467_v7, %s5397_s6  ;;  %s3183_s6 = smov 97  }
  0xf7   : > { %v3801_v8 = vpop.permute.xlu2 %2717  ;;  %v3803_v15 = vpop.permute.xlu1 %2677 }
  0xf8   : > { %v3813_v55 = vpop.permute.xlu0 %2672  ;;  %v2680_v12 = vunpack.i.h.bf16 %v3803_v15  ;;  %v3830_v6 = vunpack.i.l.bf16 %v3803_v15  ;;  %v3855_v15 = vsel %vm605_vm11, %v3823_v32, %v456_v56  ;;  %v607_v56 = vsel %vm605_vm11, %v3863_v0, %v457_v4 }
  0xf9   : > { %v5369_v58 = vunpack.i.h.bf16 %v3813_v55  ;;  %5458 = vst [vmem:[#allocation41_spill] sm:$0xff] %v3855_v15  ;;  %v980_v53 = vsel %vm609_vm15, %v3855_v15, %v3819_v40  ;;  %v5466_v60 = vunpack.i.l.bf16 %v3801_v8 }
  0xfa   : > { %v3870_v16 = vsel %vm708_vm14, %v3830_v6, %v2680_v12  ;;  %v983_v37 = vsel %vm613_vm10, %v980_v53, %v3830_v6 }
  0xfb   : > { %v897_v17 = vsel %vm5457_vm1, %v3613_v45, %v5369_v58  ;;  %vm5403_vm1 = vcmask 867328   ;;  %v987_v53 = vsel %vm617_vm12, %v983_v37, %v3671_v61  ;;  %v2634_v45 = vunpack.i.l.bf16 %v3675_v63 }
  0xfc   : > { %v3846_v18 = vsel %vm605_vm11, %v929_v5, %v897_v17  ;;  %v3884_v17 = vsel %vm609_vm15, %v607_v56, %v469_v25  ;;  %v5460_v25 = vunpack.i.h.bf16 %v3598_v38  ;;  %v2674_v38 = vunpack.i.l.bf16 %v3813_v55 }
  0xfd   : > { %v3860_v3 = vsel %vm609_vm15, %v3846_v18, %v3753_v28  ;;  %5459 = vst [vmem:[#allocation42_spill] sm:$0xff] %v3884_v17  ;;  %v984_v4 = vsel %vm613_vm10, %v3884_v17, %v3870_v16 }
  0xff   : > { %v3874_v20 = vpop.permute.xlu2 %2732  ;;  %v2683_v27 = vpop.permute.xlu1 %2682 }
 0x100   : > { %v3879_v21 = vunpack.i.h.bf16 %v3874_v20  ;;  %v3881_v5 = vpop.permute.xlu0 %719  ;;  %v2684_v40 = vunpack.i.l.bf16 %v2683_v27 }
 0x101   : > { %v3889_v44 = vsel %vm5403_vm1, %v3671_v61, %v3881_v5 }
 0x102   : > { %v988_v58 = vsel %vm617_vm12, %v984_v4, %v3889_v44  ;;  %v3903_v56 = vsel %vm821_vm13, %v5460_v25, %v3879_v21  ;;  %v2664_v4 = vunpack.i.l.bf16 %v3768_v19 }
 0x103   : > { %v2846_v35 = vpack.i.bf16 %v988_v58, %v987_v53  ;;  %v739_v58 = vsel %vm5461_vm9, %v2634_v45, %v3572_v30  ;;  %v2685_v53 = vunpack.i.h.bf16 %v2683_v27  ;;  %v3927_v30 = vsel %vm5404_vm7, %v2624_v54, %v3577_v33 }
 0x104   : > { %5463 = vst [vmem:[#allocation44_spill] sm:$0xff] %v3927_v30  ;;  %v3931_v45 = vsel %vm5384_vm6, %v2649_v46, %v3604_v41  ;;  %vm806_vm9 = vcmask 687104   ;;  %v5465_v27 = vunpack.i.h.bf16 %v3801_v8  ;;  %v3944_v62 = vsel %vm5386_vm5, %v2664_v4, %v3592_v36 }
 0x105   : > { %2847 = vrot.lane.b32.xlu1 %v2846_v35, %s5398_s24  ;;  %5464 = vst [vmem:[#allocation45_spill] sm:$0xff] %v3931_v45  ;;  %v846_v35 = vsel %vm593_vm2, %v739_v58, %v3927_v30  ;;  %vm5470_vm6 = vcmask 826368   ;;  %v5473_v4 = vunpack.i.h.bf16 %v3675_v63  ;;  %vm5474_vm5 = vcmask 695296   ;;  %s5402_s24 = smov 122  }
 0x106   : > { %v3938_v1 = vsel %vm693_vm4, %v5466_v60, %v5465_v27  ;;  %5467 = vst [vmem:[#allocation46_spill] sm:$0xff] %v3944_v62  ;;  %v2705_v60 = vunpack.i.h.bf16 %v3766_v47  ;;  %v2704_v27 = vunpack.i.l.bf16 %v3766_v47  ;;  %v3961_v58 = vsel %vm5470_vm6, %v2674_v38, %v3624_v48 }
 0x107   : > { %v3914_v25 = vpop.permute.xlu2 %2742  ;;  %v3916_v15 = vpop.permute.xlu1 %2697  ;;  %5471 = vst [vmem:[#allocation47_spill] sm:$0xff] %v3961_v58  ;;  %v3976_v47 = vsel %vm5474_vm5, %v2684_v40, %v2685_v53  ;;  %v5475_v38 = vunpack.i.h.bf16 %v3735_v50  ;;  %v5477_v50 = vunpack.i.h.bf16 %v3813_v55  ;;  %vm761_vm6 = vcmask 711680  }
 0x108   : > { %v3919_v17 = vunpack.i.h.bf16 %v3914_v25  ;;  %v3921_v37 = vpop.permute.xlu0 %2692  ;;  %v5468_v41 = vunpack.i.h.bf16 %v3916_v15  ;;  %v5469_v46 = vunpack.i.l.bf16 %v3916_v15  ;;  %v5484_v43 = vunpack.i.l.bf16 %v3916_v15 }
 0x109   : > { %vm5415_vm7 = vcmask 670720  }
 0x10a   : > { %5462 = vst [vmem:[#allocation43_spill] sm:$0xff] %v3919_v17  ;;  %v3948_v33 = vsel %vm708_vm14, %v2680_v12, %v3919_v17  ;;  %v3955_v54 = vsel %vm678_vm0, %v5469_v46, %v5468_v41  ;;  %v5472_v12 = vunpack.i.h.bf16 %v3530_v14  ;;  %v3973_v41 = vsel %vm597_vm3, %v846_v35, %v3931_v45 }
 0x10b   : > { %v911_v36 = vsel %vm605_vm11, %v3636_v52, %v3955_v54  ;;  %v927_v14 = vsel %vm601_vm8, %v3973_v41, %v3944_v62  ;;  %v5476_v35 = vunpack.i.h.bf16 %v3768_v19  ;;  %v2734_v19 = vunpack.i.l.bf16 %v3874_v20 }
 0x10c   : > { %v925_v30 = vsel %vm593_vm2, %v5473_v4, %v5472_v12  ;;  %v915_v48 = vsel %vm609_vm15, %v911_v36, %v3938_v1  ;;  %v931_v46 = vsel %vm605_vm11, %v927_v14, %v3961_v58  ;;  %v3996_v36 = vsel %vm806_vm9, %v2704_v27, %v2705_v60 }
 0x10d   : > { %v926_v52 = vsel %vm597_vm3, %v925_v30, %v5475_v38  ;;  %v3988_v63 = vsel %vm613_vm10, %v915_v48, %v3948_v33  ;;  %v935_v48 = vsel %vm609_vm15, %v931_v46, %v3976_v47  ;;  %v5479_v38 = vunpack.i.l.bf16 %v3733_v49 }
 0x10e   : > { %v930_v40 = vsel %vm601_vm8, %v926_v52, %v5476_v35  ;;  %v2694_v62 = vunpack.i.l.bf16 %v3921_v37 }
 0x10f   : > { %v4001_v30 = vsel %vm605_vm11, %v930_v40, %v5477_v50  ;;  %v4003_v12 = vpop.permute.xlu2 %2757  ;;  %v2713_v4 = vpop.permute.xlu1 %2712  ;;  %v4011_v52 = vsel %vm5474_vm5, %v2685_v53, %v5479_v38  ;;  %v939_v40 = vsel %vm613_vm10, %v935_v48, %v3996_v36  ;;  %v4034_v50 = vsel %vm821_vm13, %v2734_v19, %v3687_v13 }
 0x110   : > { %5478 = vst [vmem:[#allocation48_spill] sm:$0xff] %v4001_v30  ;;  %v2708_v27 = vpop.permute.xlu0 %2707  ;;  %v938_v35 = vsel %vm609_vm15, %v4001_v30, %v3738_v51  ;;  %v936_v53 = vsel %vm609_vm15, %v3712_v31, %v4011_v52  ;;  %v943_v38 = vsel %vm617_vm12, %v939_v40, %v4034_v50  ;;  %vm5481_vm13 = vcmask 818176  }
 0x111   : > { %v4013_v14 = vunpack.i.h.bf16 %v2708_v27  ;;  %v2709_v55 = vunpack.i.l.bf16 %v2708_v27  ;;  %vm648_vm5 = vcmask 908288  }
 0x113   : > { %v4021_v46 = vsel %vm806_vm9, %v2705_v60, %v2709_v55  ;;  %v4025_v49 = vsel %vm806_vm9, %v2709_v55, %v4013_v14  ;;  %v942_v20 = vsel %vm613_vm10, %v938_v35, %v4013_v14  ;;  %vm5489_vm9 = vmmov %vm5481_vm13 }
 0x114   : > { %v940_v48 = vsel %vm613_vm10, %v936_v53, %v4021_v46  ;;  %v941_v60 = vsel %vm613_vm10, %v3860_v3, %v4025_v49  ;;  %v4051_v13 = vsel %vm617_vm12, %v942_v20, %v3879_v21  ;;  %v2715_v20 = vunpack.i.h.bf16 %v2713_v4 }
 0x115   : > { %v944_v27 = vsel %vm617_vm12, %v940_v48, %v3725_v29  ;;  %v4047_v31 = vsel %vm617_vm12, %v941_v60, %v3903_v56  ;;  %v2695_v60 = vunpack.i.h.bf16 %v3921_v37 }
 0x116   : > { %v2851_v19 = vpack.i.bf16 %v944_v27, %v943_v38 }
 0x117   : > { %v4053_v55 = vpop.permute.xlu2 %2772  ;;  %v4055_v35 = vpop.permute.xlu1 %2727 }
 0x118   : > { %5480 = vst [vmem:[#allocation49_spill] sm:$0xff] %v4053_v55  ;;  %v2775_v3 = vunpack.i.h.bf16 %v4053_v55  ;;  %v2723_v40 = vpop.permute.xlu0 %2722  ;;  %v5391_v53 = vunpack.i.h.bf16 %v4055_v35  ;;  %v2729_v48 = vunpack.i.l.bf16 %v4055_v35  ;;  %2852 = vrot.lane.b32.xlu2 %v2851_v19, %s5410_s8  ;;  %v5483_v19 = vunpack.i.h.bf16 %v3516_v9 }
 0x119   : > { %v5487_v9 = vunpack.i.h.bf16 %v3600_v39 }
 0x11a   : > { %v4064_v38 = vsel %vm5481_vm13, %v2775_v3, %v3683_v11  ;;  %v764_v27 = vsel %vm761_vm6, %v2729_v48, %v5391_v53  ;;  %v904_v45 = vsel %vm593_vm2, %v3445_v2, %v5483_v19  ;;  %v4080_v11 = vsel %vm678_vm0, %v2695_v60, %v5484_v43 }
 0x11b   : > { %5482 = vst [vmem:[#allocation50_spill] sm:$0xff] %v4064_v38  ;;  %v854_v58 = vsel %vm601_vm8, %v3826_v26, %v764_v27  ;;  %v2714_v3 = vunpack.i.l.bf16 %v2713_v4  ;;  %v5485_v53 = vunpack.i.h.bf16 %v3556_v23  ;;  %v5486_v38 = vunpack.i.l.bf16 %v3801_v8 }
 0x11c   : > { %v2744_v19 = vunpack.i.l.bf16 %v3914_v25  ;;  %v5488_v43 = vunpack.i.l.bf16 %v4053_v55  ;;  %v910_v39 = vsel %vm605_vm11, %v3863_v0, %v4080_v11  ;;  %vm776_vm13 = vcmask 703488  }
 0x11d   : > { %v906_v30 = vsel %vm597_vm3, %v904_v45, %v5485_v53  ;;  %v4088_v26 = vsel %vm693_vm4, %v2715_v20, %v5486_v38  ;;  %v4105_v53 = vsel %vm678_vm0, %v2694_v62, %v2695_v60  ;;  %v2725_v62 = vunpack.i.h.bf16 %v2723_v40 }
 0x11e   : > { %v4093_v37 = vsel %vm601_vm8, %v906_v30, %v5487_v9  ;;  %v967_v4 = vsel %vm5489_vm9, %v3681_v10, %v5488_v43  ;;  %v5490_v30 = vunpack.i.h.bf16 %v3916_v15  ;;  %v4116_v43 = vsel %vm693_vm4, %v2714_v3, %v2715_v20 }
 0x11f   : > { %v4100_v23 = vpop.permute.xlu2 %2787  ;;  %v4102_v45 = vpop.permute.xlu1 %646  ;;  %v914_v10 = vsel %vm609_vm15, %v910_v39, %v4088_v26  ;;  %v2724_v60 = vunpack.i.l.bf16 %v2723_v40  ;;  %v997_v55 = vsel %vm609_vm15, %v3846_v18, %v967_v4  ;;  %vm5491_vm0 = vcmask 809984  }
 0x120   : > { %v912_v25 = vsel %vm605_vm11, %v4093_v37, %v5490_v30  ;;  %v5394_v38 = vunpack.i.l.bf16 %v4100_v23  ;;  %v2738_v9 = vpop.permute.xlu0 %2737  ;;  %v909_v20 = vsel %vm605_vm11, %v3823_v32, %v4105_v53  ;;  %v2759_v39 = vunpack.i.l.bf16 %v4003_v12 }
 0x121   : > { %v2740_v0 = vunpack.i.h.bf16 %v2738_v9  ;;  %v2739_v30 = vunpack.i.l.bf16 %v2738_v9  ;;  %vm663_vm4 = vcmask 900096   ;;  %v913_v18 = vsel %vm609_vm15, %v909_v20, %v4116_v43 }
 0x122   : > { %v973_v15 = vsel %vm5491_vm0, %v3667_v59, %v5394_v38  ;;  %v5492_v9 = vunpack.i.h.bf16 %v3801_v8  ;;  %v918_v32 = vsel %vm613_vm10, %v914_v10, %v3870_v16  ;;  %v4145_v3 = vsel %vm708_vm14, %v2744_v19, %v3830_v6 }
 0x123   : > { %v1001_v40 = vsel %vm613_vm10, %v997_v55, %v973_v15  ;;  %v762_v55 = vsel %vm761_vm6, %v2724_v60, %v2725_v62  ;;  %v649_v15 = vsel %vm648_vm5, %v2739_v30, %v2740_v0  ;;  %v5493_v20 = vunpack.i.h.bf16 %v4003_v12 }
 0x124   : > { %v4136_v4 = vsel %vm617_vm12, %v1001_v40, %v3903_v56  ;;  %v916_v38 = vsel %vm609_vm15, %v912_v25, %v5492_v9  ;;  %v763_v8 = vsel %vm761_vm6, %v2725_v62, %v2729_v48  ;;  %v917_v25 = vsel %vm613_vm10, %v913_v18, %v4145_v3 }
 0x125   : > { %v664_v40 = vsel %vm663_vm4, %v2759_v39, %v5493_v20  ;;  %v920_v10 = vsel %vm613_vm10, %v916_v38, %v3919_v17  ;;  %v922_v60 = vsel %vm617_vm12, %v918_v32, %v3889_v44  ;;  %v852_v30 = vsel %vm601_vm8, %v3973_v41, %v762_v55 }
 0x126   : > { %v828_v39 = vsel %vm597_vm3, %v3794_v42, %v649_v15  ;;  %v853_v18 = vsel %vm601_vm8, %v3654_v57, %v763_v8  ;;  %v650_v38 = vsel %vm648_vm5, %v2740_v0, %v4102_v45  ;;  %vm5496_vm14 = vcmask 1006592  }
 0x127   : > { %v2753_v59 = vpop.permute.xlu1 %2752  ;;  %v831_v15 = vsel %vm601_vm8, %v828_v39, %v664_v40  ;;  %vm5417_vm6 = vcmask 523264   ;;  %vm1069_vm9 = vcmask 515072   ;;  %vm1084_vm5 = vcmask 506880  }
 0x128   : > { %v2748_v6 = vpop.permute.xlu0 %2747  ;;  %v2755_v19 = vunpack.i.h.bf16 %v2753_v59  ;;  %v2754_v9 = vunpack.i.l.bf16 %v2753_v59  ;;  %v5494_v59 = vunpack.i.h.bf16 %v4055_v35  ;;  %vm5407_vm0 = vcmask 498688  }
 0x129   : > { %v2750_v48 = vunpack.i.h.bf16 %v2748_v6  ;;  %v2749_v62 = vunpack.i.l.bf16 %v2748_v6 }
 0x12a   : > { %v779_v20 = vsel %vm776_vm13, %v2754_v9, %v2755_v19  ;;  %v1168_v32 = vsel %vm593_vm2, %v5494_v59, %v2755_v19 }
 0x12b   : > { %v777_v17 = vsel %vm776_vm13, %v2749_v62, %v2750_v48  ;;  %v778_v41 = vsel %vm776_vm13, %v2750_v48, %v2754_v9  ;;  %v857_v42 = vsel %vm605_vm11, %v854_v58, %v779_v20  ;;  %v1167_v55 = vsel %vm593_vm2, %v764_v27, %v779_v20 }
 0x12c   : > { %v855_v57 = vsel %vm605_vm11, %v852_v30, %v777_v17  ;;  %v856_v0 = vsel %vm605_vm11, %v853_v18, %v778_v41  ;;  %v1166_v6 = vsel %vm593_vm2, %v763_v8, %v778_v41  ;;  %v860_v58 = vsel %vm609_vm15, %v857_v42, %v3753_v28 }
 0x12d   : > { %v1169_v35 = vsel %vm597_vm3, %v1166_v6, %v4011_v52  ;;  %v858_v19 = vsel %vm609_vm15, %v855_v57, %v3976_v47  ;;  %v859_v9 = vsel %vm609_vm15, %v856_v0, %v4011_v52  ;;  %v863_v8 = vsel %vm613_vm10, %v860_v58, %v4025_v49 }
 0x12e   : > { %v861_v27 = vsel %vm613_vm10, %v858_v19, %v3996_v36  ;;  %v862_v17 = vsel %vm613_vm10, %v859_v9, %v4021_v46  ;;  %v4193_v40 = vsel %vm601_vm8, %v1169_v35, %v4021_v46  ;;  %v834_v36 = vsel %vm605_vm11, %v831_v15, %v4105_v53 }
 0x12f   : > { %v2768_v47 = vpop.permute.xlu1 %2767  ;;  %v864_v52 = vsel %vm617_vm12, %v861_v27, %v4034_v50  ;;  %v865_v30 = vsel %vm617_vm12, %v862_v17, %v3725_v29  ;;  %v4205_v39 = vsel %vm617_vm12, %v863_v8, %v3903_v56  ;;  %v829_v46 = vsel %vm597_vm3, %v3842_v24, %v650_v38 }
 0x130   : > { %v830_v48 = vsel %vm597_vm3, %v3588_v34, %v4102_v45  ;;  %v2763_v62 = vpop.permute.xlu0 %2762  ;;  %v4212_v18 = vunpack.i.h.bf16 %v2768_v47  ;;  %v2769_v50 = vunpack.i.l.bf16 %v2768_v47  ;;  %v2866_v41 = vpack.i.bf16 %v865_v30, %v864_v52 }
 0x131   : > { %v2765_v20 = vunpack.i.h.bf16 %v2763_v62  ;;  %v2764_v59 = vunpack.i.l.bf16 %v2763_v62  ;;  %v1170_v53 = vsel %vm597_vm3, %v1167_v55, %v3753_v28  ;;  %v837_v34 = vsel %vm609_vm15, %v834_v36, %v4116_v43 }
 0x132   : > { %v726_v42 = vsel %vm5403_vm1, %v3881_v5, %v4212_v18  ;;  %v724_v24 = vsel %vm5403_vm1, %v2769_v50, %v3671_v61  ;;  %v4225_v45 = vsel %vm617_vm12, %v920_v10, %v4212_v18  ;;  %v5495_v38 = vunpack.i.h.bf16 %v4003_v12  ;;  %2867 = vrot.lane.b32.xlu2 %v2866_v41, %s3183_s6  ;;  %v5497_v50 = vld [vmem:[#allocation38_spill] sm:$0xff] }
 0x133   : > { %v666_v28 = vsel %vm663_vm4, %v2764_v59, %v2765_v20  ;;  %v921_v55 = vsel %vm617_vm12, %v917_v25, %v724_v24  ;;  %v1171_v61 = vsel %vm597_vm3, %v1168_v32, %v3738_v51  ;;  %v4239_v12 = vsel %vm617_vm12, %v3988_v63, %v726_v42  ;;  %v4249_v32 = vpop.permute.xlu2 %2802 }
 0x134   : > { %v665_v15 = vsel %vm663_vm4, %v5495_v38, %v2764_v59  ;;  %v833_v57 = vsel %vm601_vm8, %v830_v48, %v666_v28  ;;  %v2861_v10 = vpack.i.bf16 %v922_v60, %v921_v55  ;;  %v2896_v25 = vpack.i.bf16 %v4239_v12, %v4047_v31 }
 0x135   : > { %v832_v43 = vsel %vm601_vm8, %v829_v46, %v665_v15  ;;  %v836_v6 = vsel %vm605_vm11, %v833_v57, %v3955_v54  ;;  %v2911_v51 = vpack.i.bf16 %v4225_v45, %v4051_v13  ;;  %v1174_v54 = vsel %vm601_vm8, %v1171_v61, %v4013_v14 }
 0x136   : > { %v835_v0 = vsel %vm605_vm11, %v832_v43, %v4080_v11  ;;  %2862 = vrot.lane.b32.xlu1 %v2861_v10, %s5410_s8  ;;  %v839_v60 = vsel %vm609_vm15, %v836_v6, %v3938_v1  ;;  %v1173_v11 = vsel %vm601_vm8, %v1170_v53, %v4025_v49  ;;  %v4272_v1 = vsel %vm605_vm11, %v1174_v54, %v3879_v21 }
 0x137   : > { %v838_v63 = vsel %vm609_vm15, %v835_v0, %v4088_v26  ;;  %v4260_v35 = vpop.permute.xlu1 %2782  ;;  %v842_v9 = vsel %vm613_vm10, %v839_v60, %v3948_v33  ;;  %v4268_v26 = vsel %vm605_vm11, %v1173_v11, %v3903_v56  ;;  %v840_v14 = vsel %vm613_vm10, %v837_v34, %v4145_v3 }
 0x138   : > { %v841_v19 = vsel %vm613_vm10, %v838_v63, %v3870_v16  ;;  %v4274_v49 = vpop.permute.xlu0 %2777  ;;  %v843_v58 = vsel %vm617_vm12, %v840_v14, %v724_v24  ;;  %v4282_v17 = vsel %vm617_vm12, %v842_v9, %v726_v42  ;;  %v2785_v30 = vunpack.i.h.bf16 %v4260_v35 }
 0x139   : > { %v844_v16 = vsel %vm617_vm12, %v841_v19, %v3889_v44  ;;  %v2901_v56 = vpack.i.bf16 %v4282_v17, %v4205_v39  ;;  %v2780_v46 = vunpack.i.h.bf16 %v4274_v49  ;;  %v2779_v48 = vunpack.i.l.bf16 %v4274_v49 }
 0x13a   : > { %v2871_v27 = vpack.i.bf16 %v844_v16, %v843_v58  ;;  %2882 = vrot.lane.b32.xlu2 %v3467_v7, %s5402_s24  ;;  %v2784_v62 = vunpack.i.l.bf16 %v4260_v35  ;;  %s3186_s24 = smov 121   ;;  %v2805_v15 = vunpack.i.h.bf16 %v4249_v32  ;;  %v2804_v28 = vunpack.i.l.bf16 %v4249_v32 }
 0x13b   : > { %v4293_v8 = vpop.permute.xlu2 %2817  ;;  %vm5405_vm4 = vcmask 490496   ;;  %vm5414_vm13 = vcmask 457728   ;;  %vm5418_vm1 = vcmask 474112  }
 0x13c   : > { %2872 = vrot.lane.b32.xlu0 %v2871_v27, %s3183_s6  ;;  %v1100_v0 = vsel %vm5407_vm0, %v2804_v28, %v2805_v15  ;;  %v2820_v58 = vunpack.i.h.bf16 %v4293_v8  ;;  %v2819_v16 = vunpack.i.l.bf16 %v4293_v8  ;;  %vm5409_vm0 = vcmask 465920  }
 0x13e   : > { %2877 = vrot.lane.b32.xlu1 %v3467_v7, %s3185_s15 }
 0x13f   : > { %v4291_v3 = vpop.permute.xlu1 %2797 }
 0x140   : > { %v4295_v47 = vpop.permute.xlu0 %2792  ;;  %v2799_v52 = vunpack.i.l.bf16 %v4291_v3 }
 0x141   : > { %v2795_v53 = vunpack.i.h.bf16 %v4295_v47  ;;  %v2794_v24 = vunpack.i.l.bf16 %v4295_v47  ;;  %v4636_v47 = vld [vmem:[%s5312_s2 + $0x10] sm:$0xff] }
 0x142   : > { %v954_v36 = vsel %vm5496_vm14, %v3817_v22, %v2799_v52  ;;  %1065 = vrot.lane.b32.xlu2 %v3445_v2, %s3168_s10  ;;  %vm5406_vm14 = vcmask 482304  }
 0x143   : > { %v981_v20 = vsel %vm609_vm15, %v5497_v50, %v954_v36  ;;  %v4335_v55 = vpop.permute.xlu2 %2822  ;;  %v1085_v43 = vsel %vm1084_vm5, %v2794_v24, %v2795_v53  ;;  %v1145_v24 = vsel %vm5418_vm1, %v2819_v16, %v2820_v58 }
 0x144   : > { %2887 = vrot.lane.b32.xlu0 %v3467_v7, %s3186_s24  ;;  %v985_v59 = vsel %vm613_vm10, %v981_v20, %v3948_v33  ;;  %v1055_v7 = vsel %vm5417_vm6, %v2779_v48, %v2780_v46  ;;  %v1070_v33 = vsel %vm1069_vm9, %v2784_v62, %v2785_v30  ;;  %v2825_v27 = vunpack.i.h.bf16 %v4335_v55 }
 0x145   : > { %v4315_v41 = vsel %vm617_vm12, %v985_v59, %v726_v42  ;;  %v1187_v61 = vsel %vm593_vm2, %v1055_v7, %v1070_v33  ;;  %v2824_v48 = vunpack.i.l.bf16 %v4335_v55 }
 0x146   : > { %1050 = vrot.lane.b32.xlu1 %v3445_v2, %s3169_s23  ;;  %v2891_v34 = vpack.i.bf16 %v4315_v41, %v4136_v4  ;;  %v1190_v6 = vsel %vm597_vm3, %v1187_v61, %v1085_v43  ;;  %v5503_v41 = vld [vmem:[#allocation45_spill] sm:$0xff] }
 0x147   : > { %v4329_v42 = vpop.permute.xlu1 %2812  ;;  %v1193_v9 = vsel %vm601_vm8, %v1190_v6, %v1100_v0  ;;  %v1016_v33 = vsel %vm5415_vm7, %v2824_v48, %v2825_v27  ;;  %v1175_v0 = vsel %vm605_vm11, %v4193_v40, %v3725_v29  ;;  %vm5519_vm7 = vcmask 1006592  }
 0x148   : > { %v4331_v38 = vpop.permute.xlu0 %2807  ;;  %v2815_v63 = vunpack.i.h.bf16 %v4329_v42  ;;  %v2814_v60 = vunpack.i.l.bf16 %v4329_v42  ;;  %v1335_v42 = vld [vmem:[%s5313_s3 + $0x20] sm:$0xff] }
 0x149   : > { %v2810_v57 = vunpack.i.h.bf16 %v4331_v38  ;;  %v2809_v10 = vunpack.i.l.bf16 %v4331_v38 }
 0x14a   : > { %1110 = vrot.lane.b32.xlu2 %v3445_v2, %s3174_s17  ;;  %v1130_v62 = vsel %vm5406_vm14, %v2814_v60, %v2815_v63  ;;  %vm1027_vm14 = vcmask 662528  }
 0x14b   : > { %v1115_v54 = vsel %vm5405_vm4, %v2809_v10, %v2810_v57  ;;  %v4366_v36 = vpop.permute.xlu2 %2837  ;;  %vm5408_vm4 = vcmask 654336  }
 0x14c   : > { %1080 = vrot.lane.b32.xlu0 %v3445_v2, %s3171_s21  ;;  %v1196_v50 = vsel %vm605_vm11, %v1193_v9, %v1115_v54  ;;  %v2840_v20 = vunpack.i.h.bf16 %v4366_v36  ;;  %v2839_v59 = vunpack.i.l.bf16 %v4366_v36 }
 0x14d   : > { %v1199_v7 = vsel %vm609_vm15, %v1196_v50, %v1130_v62 }
 0x14e   : > { %1095 = vrot.lane.b32.xlu1 %v3445_v2, %s3170_s18  ;;  %v1202_v54 = vsel %vm613_vm10, %v1199_v7, %v1145_v24 }
 0x14f   : > { %v4355_v11 = vpop.permute.xlu1 %1313 }
 0x150   : > { %v1312_v19 = vpop.permute.xlu0 %1311 }
 0x151   : > { %v1320_v14 = vsel %vm5414_vm13, %v1312_v19, %v4355_v11  ;;  %v1040_v19 = vsel %vm5408_vm4, %v2839_v59, %v2840_v20  ;;  %vm5412_vm4 = vcmask 39936  }
 0x152   : > { %2328 = vmatpush.msk.msra.mxu0 %vm593_vm2, %v1320_v14  ;;  %1315 = vrot.lane.b32.xlu2 %v3445_v2, %s3176_s28  ;;  %v1178_v14 = vsel %vm609_vm15, %v1175_v0, %v1016_v33  ;;  %v5500_v33 = vld [vmem:[#allocation23_spill] sm:$0xff]  ;;  %v5504_v0 = vld [vmem:[#allocation46_spill] sm:$0xff] }
 0x154   : > { %1125 = vrot.lane.b32.xlu0 %v3445_v2, %s3173_s25 }
 0x156   : > { %1140 = vrot.lane.b32.xlu1 %v3445_v2, %s3172_s20 }
 0x157   : > { %v4389_v28 = vpop.permute.xlu1 %2832 }
 0x158   : > { %v4391_v61 = vpop.permute.xlu0 %2827  ;;  %v2835_v43 = vunpack.i.h.bf16 %v4389_v28  ;;  %v2834_v10 = vunpack.i.l.bf16 %v4389_v28  ;;  %v1337_v28 = vld [vmem:[%s5313_s3 + $0x30] sm:$0xff] }
 0x159   : > { %v2830_v6 = vunpack.i.h.bf16 %v4391_v61  ;;  %v2829_v60 = vunpack.i.l.bf16 %v4391_v61 }
 0x15a   : > { %v1028_v9 = vsel %vm1027_vm14, %v2834_v10, %v2835_v43  ;;  %1025 = vrot.lane.b32.xlu2 %v3445_v2, %s3177_s27  ;;  %s5498_s27 = smov 80   ;;  %v5501_v10 = vld [vmem:[#allocation44_spill] sm:$0xff] }
 0x15b   : > { %v1160_v29 = vsel %vm5409_vm0, %v2829_v60, %v2830_v6  ;;  %v1181_v40 = vsel %vm613_vm10, %v1178_v14, %v1028_v9  ;;  %vm5411_vm0 = vcmask 982016   ;;  %v5505_v9 = vld [vmem:[#allocation47_spill] sm:$0xff] }
 0x15c   : > { %1013 = vrot.lane.b32.xlu0 %v3445_v2, %s3175_s26  ;;  %v1205_v16 = vsel %vm617_vm12, %v1202_v54, %v1160_v29  ;;  %v1184_v48 = vsel %vm617_vm12, %v1181_v40, %v1040_v19  ;;  %s5499_s26 = smov 5   ;;  %v2919_v54 = vld [vmem:[%s3423_s22] sm:$0x1f]  ;;  %s5517_s22 = smov 51  }
 0x15d   : > { %1415 = vmatpush.msra.mxu0 %v1205_v16  ;;  %v1045_v19 = vperm.slane %v2919_v54, 4  ;;  %v5506_v29 = vld [vmem:[#allocation33_spill] sm:$0xff]  ;;  %v5508_v16 = vld [vmem:[#allocation50_spill] sm:$0xff] }
 0x15e   : > { %1155 = vrot.lane.b32.xlu1 %v3445_v2, %s3179_s29  ;;  %v5513_v54 = vld [vmem:[#allocation49_spill] sm:$0xff] }
 0x15f   : > { %1416 = vmatpush.msra.mxu0 %v1184_v48 }
 0x160   : > { %v4420_v62 = vpop.permute.xlu0 %2842 }
 0x161   : > { %v2845_v50 = vunpack.i.h.bf16 %v4420_v62  ;;  %v2844_v59 = vunpack.i.l.bf16 %v4420_v62  ;;  %v1334_v62 = vld [vmem:[%s5313_s3 + $0x18] sm:$0xff] }
 0x162   : > { %2897 = vrot.lane.b32.xlu2 %v2896_v25, %s5410_s8  ;;  %s5502_s8 = smov 120  }
 0x163   : > { %v1302_v24 = vsel %vm5412_vm4, %v2844_v59, %v2845_v50 }
 0x164   : > { %1037 = vrot.lane.b32.xlu0 %v3445_v2, %s5498_s27  ;;  %1417 = vmatpush.msra.mxu0 %v1302_v24  ;;  %v2790_v2 = vunpack.i.h.bf16 %v4100_v23 }
 0x166   : > { %2892 = vrot.lane.b32.xlu1 %v2891_v34, %s5499_s26 }
 0x168   : > { %v4437_v7 = vpop.permute.xlu0 %2857 }
 0x169   : > { %v2860_v31 = vunpack.i.h.bf16 %v4437_v7  ;;  %v2859_v12 = vunpack.i.l.bf16 %v4437_v7 }
 0x16a   : > { %585 = vrot.lane.b32.xlu2 %v5500_v33, %s3185_s15  ;;  %s3190_s15 = smov 79  }
 0x16b   : > { %v504_v25 = vsel %vm5411_vm0, %v2859_v12, %v2860_v31  ;;  %vm5507_vm0 = vcmask 809984  }
 0x16c   : > { %v621_v4 = vsel %vm593_vm2, %v504_v25, %v5501_v10  ;;  %501 = vrot.lane.b32.xlu0 %v5500_v33, %s5502_s8  ;;  %v576_v40 = vsel %vm5507_vm0, %v2790_v2, %v5506_v29  ;;  %s5509_s8 = smov 122   ;;  %vm5413_vm0 = vcmask 416768   ;;  %v5510_v10 = vld [vmem:[#allocation37_spill] sm:$0xff] }
 0x16d   : > { %v624_v34 = vsel %vm597_vm3, %v621_v4, %v5503_v41  ;;  %v5511_v4 = vunpack.i.h.bf16 %v5510_v10 }
 0x16e   : > { %2902 = vrot.lane.b32.xlu1 %v2901_v56, %s3183_s6  ;;  %v627_v60 = vsel %vm601_vm8, %v624_v34, %v5504_v0  ;;  %v5512_v0 = vld [vmem:[#allocation43_spill] sm:$0xff]  ;;  %s3188_s6 = smov 77  }
 0x16f   : > { %v630_v14 = vsel %vm605_vm11, %v627_v60, %v5505_v9  ;;  %v979_v41 = vsel %vm605_vm11, %v4093_v37, %v5511_v4  ;;  %v5514_v9 = vunpack.i.l.bf16 %v5513_v54  ;;  %v2800_v54 = vunpack.i.h.bf16 %v4291_v3 }
 0x170   : > { %v633_v48 = vsel %vm609_vm15, %v630_v14, %v5508_v16  ;;  %v982_v34 = vsel %vm609_vm15, %v979_v41, %v2799_v52  ;;  %v5515_v14 = vld [vmem:[#allocation48_spill] sm:$0xff] }
 0x171   : > { %v4467_v59 = vsel %vm613_vm10, %v633_v48, %v576_v40  ;;  %v986_v60 = vsel %vm613_vm10, %v982_v34, %v5512_v0  ;;  %v998_v29 = vsel %vm609_vm15, %v5515_v14, %v5514_v9  ;;  %v5516_v40 = vunpack.i.l.bf16 %v4100_v23 }
 0x172   : > { %1052 = vrot.lane.b32.xlu2 %v1045_v19, %s3169_s23  ;;  %v4472_v39 = vpop.permute.xlu2 %2852  ;;  %v990_v52 = vsel %vm617_vm12, %v986_v60, %v4212_v18  ;;  %s3192_s23 = smov 55  }
 0x173   : > { %v2855_v56 = vunpack.i.h.bf16 %v4472_v39  ;;  %v2854_v24 = vunpack.i.l.bf16 %v4472_v39  ;;  %v1002_v37 = vsel %vm613_vm10, %v998_v29, %v5516_v40  ;;  %v4753_v39 = vld [vmem:[%s5312_s2 + $0x28] sm:$0xff] }
 0x174   : > { %477 = vrot.lane.b32.xlu0 %v5500_v33, %s5509_s8  ;;  %v1006_v16 = vsel %vm617_vm12, %v1002_v37, %v3879_v21  ;;  %s5577_s8 = smov 101  }
 0x175   : > { %v2906_v48 = vpack.i.bf16 %v990_v52, %v1006_v16  ;;  %v5518_v52 = vld [vmem:[#allocation40_spill] sm:$0xff] }
 0x176   : > { %489 = vrot.lane.b32.xlu1 %v5500_v33, %s3186_s24  ;;  %v1265_v33 = vsel %vm5413_vm0, %v2854_v24, %v2855_v56  ;;  %v468_v16 = vsel %vm5519_vm7, %v2800_v54, %v5518_v52  ;;  %v4598_v52 = vld [vmem:[%s5312_s2 + $0x8] sm:$0xff]  ;;  %vm5521_vm7 = vcmask 498688   ;;  %s5579_s24 = smov 100  }
 0x177   : > { %v4476_v17 = vpop.permute.xlu1 %2847 }
 0x178   : > { %v2850_v12 = vunpack.i.h.bf16 %v4476_v17  ;;  %v2849_v25 = vunpack.i.l.bf16 %v4476_v17 }
 0x17a   : > { %v1299_v2 = vsel %vm5412_vm4, %v2849_v25, %v2850_v12  ;;  %1097 = vrot.lane.b32.xlu2 %v1045_v19, %s3170_s18  ;;  %vm5416_vm4 = vcmask 793600   ;;  %s5570_s18 = scalar_lea.vmem [#allocation6], %s3431_s13  ;;  %s5571_s13 = smov 126  }
 0x17b   : > { %1418 = vmatpush.msra.mxu0 %v1299_v2 }
 0x17c   : > { %1067 = vrot.lane.b32.xlu0 %v1045_v19, %s3168_s10  ;;  %s3191_s10 = smov 78  }
 0x17d   : > { %1419 = vmatpush.msra.mxu0 %v1265_v33 }
 0x17e   : > { %1082 = vrot.lane.b32.xlu1 %v1045_v19, %s3171_s21  ;;  %s5572_s21 = smov 127  }
 0x182   : > { %1142 = vrot.lane.b32.xlu2 %v1045_v19, %s3172_s20  ;;  %s5573_s20 = smov 125  }
 0x184   : > { %1112 = vrot.lane.b32.xlu0 %v1045_v19, %s3174_s17  ;;  %s5575_s17 = smov 124  }
 0x186   : > { %1127 = vrot.lane.b32.xlu1 %v1045_v19, %s3173_s25  ;;  %s5574_s25 = smov 104  }
 0x18a   : > { %2907 = vrot.lane.b32.xlu2 %v2906_v48, %s5499_s26  ;;  %s5576_s26 = smov 103  }
 0x18c   : > { %1317 = vrot.lane.b32.xlu0 %v1045_v19, %s3176_s28  ;;  %v4516_v24 = vpop.permute.xlu2 %2867 }
 0x18d   : > { %v2870_v2 = vunpack.i.h.bf16 %v4516_v24  ;;  %v2869_v33 = vunpack.i.l.bf16 %v4516_v24 }
 0x18e   : > { %1157 = vrot.lane.b32.xlu1 %v1045_v19, %s3179_s29  ;;  %s3189_s29 = smov 76  }
 0x194   : > { %2912 = vrot.lane.b32.xlu0 %v2911_v51, %s5517_s22  ;;  %v4523_v23 = vpop.permute.xlu2 %2882  ;;  %v1229_v51 = vsel %vm5416_vm4, %v2869_v33, %v2870_v2  ;;  %s5578_s22 = smov 102  }
 0x195   : > { %v2885_v29 = vunpack.i.h.bf16 %v4523_v23  ;;  %v2884_v40 = vunpack.i.l.bf16 %v4523_v23  ;;  %v4803_v23 = vld [vmem:[%s5312_s2 + $0x30] sm:$0xff] }
 0x19c   : > { %v4525_v18 = vpop.permute.xlu2 %1065 }
 0x19d   : > { %v1071_v49 = vsel %vm1069_vm9, %v2785_v30, %v4525_v18 }
 0x1a4   : > { %v4527_v25 = vpop.permute.xlu2 %1110 }
 0x1a8   : > { %v4529_v21 = vpop.permute.xlu1 %2862 }
 0x1a9   : > { %v2865_v10 = vunpack.i.h.bf16 %v4529_v21  ;;  %v2864_v19 = vunpack.i.l.bf16 %v4529_v21  ;;  %v5536_v21 = vld [vmem:[#allocation36_spill] sm:$0xff] }
 0x1ab   : > { %v1262_v13 = vsel %vm5413_vm0, %v2864_v19, %v2865_v10  ;;  %vm587_vm0 = vcmask 801792  }
 0x1ac   : > { %1420 = vmatpush.msra.mxu0 %v1262_v13  ;;  %v4538_v45 = vpop.permute.xlu2 %1315 }
 0x1ad   : > { %v1321_v41 = vsel %vm5414_vm13, %v4355_v11, %v4538_v45  ;;  %vm479_vm13 = vcmask 998400  }
 0x1ae   : > { %v4543_v4 = vpop.permute.xlu0 %2872  ;;  %1421 = vmatpush.msra.mxu0 %v1229_v51  ;;  %2337 = vmatpush.msk.msra.mxu1 %vm593_vm2, %v1321_v41  ;;  %v480_v33 = vsel %vm479_vm13, %v2884_v40, %v2885_v29  ;;  %v5520_v41 = vld [vmem:[#allocation41_spill] sm:$0xff] }
 0x1af   : > { %v2875_v34 = vunpack.i.h.bf16 %v4543_v4  ;;  %v2874_v0 = vunpack.i.l.bf16 %v4543_v4 }
 0x1b0   : > { %v4551_v60 = vpop.permute.xlu1 %2877 }
 0x1b1   : > { %v2880_v9 = vunpack.i.h.bf16 %v4551_v60  ;;  %v2879_v14 = vunpack.i.l.bf16 %v4551_v60  ;;  %v1227_v11 = vsel %vm5416_vm4, %v2874_v0, %v2875_v34  ;;  %vm491_vm4 = vcmask 990208  }
 0x1b2   : > { %1422 = vmatpush.msra.mxu0 %v1227_v11 }
 0x1b3   : > { %v588_v37 = vsel %vm587_vm0, %v2879_v14, %v2880_v9  ;;  %v4586_v14 = vld [vmem:[%s5312_s2] sm:$0xff] }
 0x1b4   : > { %v639_v3 = vsel %vm617_vm12, %v4467_v59, %v588_v37  ;;  %v610_v59 = vsel %vm609_vm15, %v5520_v41, %v468_v16  ;;  %v3187_v37 = vmov 0   ;;  %v1336_v16 = vld [vmem:[%s5313_s3 + $0x28] sm:$0xff] }
 0x1b5   : > { %1423 = vmatpush.msra.mxu0 %v639_v3  ;;  %v614_v54 = vsel %vm613_vm10, %v610_v59, %v480_v33  ;;  %2918 = vset.pattern.permute.xlu0 %v3187_v37  ;;  %v4603_v33 = vpop.permute.xlu2 %1025  ;;  %v1338_v59 = vld [vmem:[%s5313_s3 + $0x38] sm:$0xff] }
 0x1b6   : > { %v4568_v48 = vpop.permute.xlu0 %2887  ;;  %2916 = vset.pattern.permute.xlu1 %v3187_v37  ;;  %2917 = vset.pattern.permute.xlu2 %v3187_v37 }
 0x1b7   : > { %v2890_v19 = vunpack.i.h.bf16 %v4568_v48  ;;  %v2889_v13 = vunpack.i.l.bf16 %v4568_v48  ;;  %1366 = vperm.xlu0 %2918, %v1336_v16   ;;  %1376 = vperm.xlu1 %2916, %v1338_v59   ;;  %v1563_v48 = vld [vmem:[%s5315_s5 + $0x18] sm:$0xff] }
 0x1b8   : > { %v4575_v51 = vpop.permute.xlu1 %1050  ;;  %1371 = vperm.xlu2 %2917, %v1337_v28   ;;  %v5538_v28 = vld [vmem:[#allocation35_spill] sm:$0xff] }
 0x1b9   : > { %v492_v0 = vsel %vm491_vm4, %v2889_v13, %v2890_v19  ;;  %v1056_v41 = vsel %vm5417_vm6, %v2780_v46, %v4575_v51  ;;  %vm5523_vm6 = vcmask 490496  }
 0x1ba   : > { %v618_v11 = vsel %vm617_vm12, %v614_v54, %v492_v0  ;;  %v1116_v30 = vsel %vm5523_vm6, %v2810_v57, %v4527_v25  ;;  %vm5524_vm6 = vcmask 670720   ;;  %v4677_v57 = vld [vmem:[%s5312_s2 + $0x18] sm:$0xff] }
 0x1bb   : > { %1424 = vmatpush.msra.mxu0 %v618_v11  ;;  %v1331_v11 = vld [vmem:[%s5313_s3] sm:$0xff] }
 0x1bc   : > { %2329 = vmatmul.msk.f32.vlgmr.msra.gmra.mxu0 %vm1027_vm14, %v4586_v14 }
 0x1bd   : > { %v4643_v35 = vpop.permute.xlu2 %2897 }
 0x1be   : > { %v4591_v40 = vpop.permute.xlu0 %1080 }
 0x1bf   : > { %v1086_v0 = vsel %vm1084_vm5, %v2795_v53, %v4591_v40  ;;  %v1188_v53 = vsel %vm593_vm2, %v1056_v41, %v1071_v49  ;;  %1341 = vperm.xlu0 %2918, %v1331_v11   ;;  %1361 = vperm.xlu1 %2916, %v1335_v42  }
 0x1c0   : > { %v4593_v3 = vpop.permute.xlu1 %1095  ;;  %v1191_v37 = vsel %vm597_vm3, %v1188_v53, %v1086_v0  ;;  %1356 = vperm.xlu2 %2917, %v1334_v62  }
 0x1c1   : > { %v1101_v46 = vsel %vm5521_vm7, %v2805_v15, %v4593_v3  ;;  %vm5522_vm7 = vcmask 482304  }
 0x1c2   : > { %v1194_v16 = vsel %vm601_vm8, %v1191_v37, %v1101_v46 }
 0x1c3   : > { %v1197_v59 = vsel %vm605_vm11, %v1194_v16, %v1116_v30  ;;  %v2899_v16 = vunpack.i.l.bf16 %v4643_v35  ;;  %v2900_v30 = vunpack.i.h.bf16 %v4643_v35  ;;  %v5557_v35 = vld [vmem:[#allocation39_spill] sm:$0xff] }
 0x1c4   : > { %2330 = vmatmul.msk.f32.gmra.mxu0 %vm1027_vm14, %v4598_v52 }
 0x1c6   : > { %v4607_v13 = vpop.permute.xlu0 %1125 }
 0x1c7   : > { %v1131_v32 = vsel %vm5522_vm7, %v2815_v63, %v4607_v13  ;;  %vm5525_vm7 = vcmask 465920  }
 0x1c8   : > { %v4620_v54 = vpop.permute.xlu1 %1140  ;;  %v1200_v0 = vsel %vm609_vm15, %v1197_v59, %v1131_v32 }
 0x1c9   : > { %v1146_v15 = vsel %vm5418_vm1, %v2820_v58, %v4620_v54  ;;  %vm5530_vm1 = vcmask 416768  }
 0x1ca   : > { %v1203_v63 = vsel %vm613_vm10, %v1200_v0, %v1146_v15  ;;  %v1266_v17 = vsel %vm5530_vm1, %v2855_v56, %v2899_v16  ;;  %v5531_v0 = vld [vmem:[#allocation28_spill] sm:$0xff]  ;;  %v1263_v56 = vsel %vm5530_vm1, %v2865_v10, %v2900_v30  ;;  %vm5545_vm1 = vcmask 474112  }
 0x1cc   : > { %2331 = vmatmul.msk.f32.gmra.mxu0 %vm1027_vm14, %v4636_v47 }
 0x1ce   : > { %v4657_v41 = vpop.permute.xlu0 %1013 }
 0x1cf   : > { %v1017_v38 = vsel %vm5524_vm6, %v2825_v27, %v4657_v41  ;;  %v1029_v27 = vsel %vm1027_vm14, %v2835_v43, %v4603_v33  ;;  %vm5526_vm6 = vcmask 654336   ;;  %v1333_v43 = vld [vmem:[%s5313_s3 + $0x10] sm:$0xff] }
 0x1d0   : > { %v4661_v11 = vpop.permute.xlu1 %1155  ;;  %v1179_v55 = vsel %vm609_vm15, %v4268_v26, %v1017_v38  ;;  %1351 = vperm.xlu1 %2916, %v1333_v43  }
 0x1d1   : > { %v1161_v8 = vsel %vm5525_vm7, %v2830_v6, %v4661_v11  ;;  %v4691_v6 = vpop.permute.xlu2 %585  ;;  %v1182_v46 = vsel %vm613_vm10, %v1179_v55, %v1029_v27  ;;  %vm5527_vm7 = vcmask 39936  }
 0x1d2   : > { %v1206_v58 = vsel %vm617_vm12, %v1203_v63, %v1161_v8  ;;  %v5532_v8 = vld [vmem:[#allocation29_spill] sm:$0xff] }
 0x1d3   : > { %1456 = vmatpush.msra.mxu1 %v1206_v58  ;;  %v5533_v58 = vld [vmem:[#allocation30_spill] sm:$0xff] }
 0x1d4   : > { %2332 = vmatmul.msk.f32.gmra.mxu0 %vm1027_vm14, %v4677_v57 }
 0x1d6   : > { %v4689_v61 = vpop.permute.xlu0 %1037 }
 0x1d7   : > { %v1041_v49 = vsel %vm5526_vm6, %v2840_v20, %v4689_v61  ;;  %v4712_v20 = vld [vmem:[%s5312_s2 + $0x20] sm:$0xff]  ;;  %vm5528_vm6 = vmmov %vm5527_vm7 }
 0x1d8   : > { %v1185_v26 = vsel %vm617_vm12, %v1182_v46, %v1041_v49  ;;  %v4699_v53 = vpop.permute.xlu1 %2892  ;;  %v5535_v49 = vld [vmem:[#allocation31_spill] sm:$0xff]  ;;  %1581 = vperm.xlu1 %2916, %v1563_v48  }
 0x1d9   : > { %1457 = vmatpush.msra.mxu1 %v1185_v26  ;;  %v2895_v37 = vunpack.i.h.bf16 %v4699_v53  ;;  %v2894_v36 = vunpack.i.l.bf16 %v4699_v53  ;;  %v1053_v38 = vpop.permute.xlu2 %1052 }
 0x1db   : > { %v1303_v32 = vsel %vm5527_vm7, %v2845_v50, %v2894_v36  ;;  %v1300_v15 = vsel %vm5528_vm6, %v2850_v12, %v2895_v37  ;;  %vm5529_vm7 = vcmask 982016   ;;  %vm5534_vm6 = vcmask 793600  }
 0x1dc   : > { %2333 = vmatmul.msk.f32.gmra.mxu0 %vm1027_vm14, %v4712_v20  ;;  %1458 = vmatpush.msra.mxu1 %v1303_v32 }
 0x1de   : > { %v4728_v59 = vpop.permute.xlu0 %501  ;;  %1459 = vmatpush.msra.mxu1 %v1300_v15 }
 0x1df   : > { %v505_v50 = vsel %vm5529_vm7, %v2860_v31, %v4728_v59  ;;  %vm5537_vm7 = vmmov %vm5534_vm6 }
 0x1e0   : > { %v622_v12 = vsel %vm593_vm2, %v505_v50, %v5531_v0  ;;  %v4744_v42 = vpop.permute.xlu1 %2902  ;;  %1460 = vmatpush.msra.mxu1 %v1266_v17  ;;  %v4818_v0 = vld [vmem:[%s5312_s2 + $0x38] sm:$0xff] }
 0x1e1   : > { %v625_v63 = vsel %vm597_vm3, %v622_v12, %v5532_v8  ;;  %v2905_v7 = vunpack.i.h.bf16 %v4744_v42  ;;  %v2904_v31 = vunpack.i.l.bf16 %v4744_v42  ;;  %v1098_v50 = vpop.permute.xlu2 %1097 }
 0x1e2   : > { %v628_v55 = vsel %vm601_vm8, %v625_v63, %v5533_v58  ;;  %1461 = vmatpush.msra.mxu1 %v1263_v56  ;;  %v1560_v58 = vld [vmem:[%s5315_s5] sm:$0xff] }
 0x1e3   : > { %v1230_v27 = vsel %vm5534_vm6, %v2870_v2, %v2904_v31  ;;  %v631_v46 = vsel %vm605_vm11, %v628_v55, %v5535_v49  ;;  %v1228_v26 = vsel %vm5537_vm7, %v2875_v34, %v2905_v7  ;;  %v589_v2 = vsel %vm587_vm0, %v2880_v9, %v4691_v6  ;;  %v1332_v34 = vld [vmem:[%s5313_s3 + $0x8] sm:$0xff]  ;;  %1566 = vperm.xlu1 %2916, %v1560_v58  }
 0x1e4   : > { %2334 = vmatmul.msk.f32.gmra.mxu0 %vm1027_vm14, %v4753_v39  ;;  %1462 = vmatpush.msra.mxu1 %v1230_v27  ;;  %v634_v10 = vsel %vm609_vm15, %v631_v46, %v5536_v21  ;;  %v5539_v9 = vld [vmem:[#allocation42_spill] sm:$0xff]  ;;  %vm5544_vm0 = vcmask 457728   ;;  %vm5547_vm6 = vcmask 465920   ;;  %vm5550_vm7 = vcmask 39936  }
 0x1e5   : > { %v637_v24 = vsel %vm613_vm10, %v634_v10, %v5538_v28  ;;  %1346 = vperm.xlu2 %2917, %v1332_v34  }
 0x1e6   : > { %v4784_v43 = vpop.permute.xlu0 %477  ;;  %1463 = vmatpush.msra.mxu1 %v1228_v26  ;;  %v640_v4 = vsel %vm617_vm12, %v637_v24, %v589_v2  ;;  %v5546_v2 = vld [vmem:[#allocation24_spill] sm:$0xff] }
 0x1e7   : > { %v481_v32 = vsel %vm479_vm13, %v2885_v29, %v4784_v43  ;;  %vm5541_vm13 = vcmask 490496  }
 0x1e8   : > { %v4794_v15 = vpop.permute.xlu1 %489  ;;  %1464 = vmatpush.msra.mxu1 %v640_v4  ;;  %v615_v29 = vsel %vm613_vm10, %v5539_v9, %v481_v32  ;;  %v623_v32 = vsel %vm593_vm2, %v4728_v59, %v5546_v2 }
 0x1e9   : > { %v493_v60 = vsel %vm491_vm4, %v2890_v19, %v4794_v15  ;;  %v1143_v12 = vpop.permute.xlu2 %1142  ;;  %vm5540_vm4 = vcmask 523264  }
 0x1ea   : > { %v619_v62 = vsel %vm617_vm12, %v615_v29, %v493_v60  ;;  %v1057_v55 = vsel %vm5540_vm4, %v4575_v51, %v1053_v38  ;;  %v1147_v24 = vsel %vm5545_vm1, %v4620_v54, %v1143_v12  ;;  %v5548_v29 = vld [vmem:[#allocation26_spill] sm:$0xff]  ;;  %v5552_v12 = vld [vmem:[#allocation27_spill] sm:$0xff]  ;;  %vm5553_vm4 = vcmask 416768  }
 0x1eb   : > { %1465 = vmatpush.msra.mxu1 %v619_v62 }
 0x1ec   : > { %2335 = vmatmul.msk.f32.gmra.mxu0 %vm1027_vm14, %v4803_v23  ;;  %2338 = vmatmul.msk.f32.vlgmr.msra.gmra.mxu1 %vm1027_vm14, %v4586_v14 }
 0x1ee   : > { %v1068_v19 = vpop.permute.xlu0 %1067 }
 0x1ef   : > { %v1072_v8 = vsel %vm1069_vm9, %v4525_v18, %v1068_v19  ;;  %vm5542_vm9 = vcmask 498688  }
 0x1f0   : > { %v1083_v17 = vpop.permute.xlu1 %1082  ;;  %v1189_v27 = vsel %vm593_vm2, %v1057_v55, %v1072_v8 }
 0x1f1   : > { %v1087_v63 = vsel %vm1084_vm5, %v4591_v40, %v1083_v17  ;;  %v1102_v40 = vsel %vm5542_vm9, %v4593_v3, %v1098_v50  ;;  %vm5543_vm5 = vcmask 482304   ;;  %v2908_v28 = vpop.permute.xlu2 %2907 }
 0x1f2   : > { %v1192_v46 = vsel %vm597_vm3, %v1189_v27, %v1087_v63  ;;  %v2909_v60 = vunpack.i.l.bf16 %v2908_v28  ;;  %v5555_v63 = vld [vmem:[#allocation34_spill] sm:$0xff] }
 0x1f3   : > { %v1195_v10 = vsel %vm601_vm8, %v1192_v46, %v1102_v40 }
 0x1f4   : > { %2336 = vmatmul.msk.f32.gmra.mxu0 %vm1027_vm14, %v4818_v0  ;;  %2339 = vmatmul.msk.f32.gmra.mxu1 %vm1027_vm14, %v4598_v52  ;;  %v1304_v48 = vsel %vm5550_vm7, %v2894_v36, %v2909_v60 }
 0x1f6   : > { %v1113_v56 = vpop.permute.xlu0 %1112 }
 0x1f7   : > { %v1117_v18 = vsel %vm5541_vm13, %v4527_v25, %v1113_v56  ;;  %v1561_v25 = vld [vmem:[%s5315_s5 + $0x8] sm:$0xff] }
 0x1f8   : > { %v1128_v49 = vpop.permute.xlu1 %1127  ;;  %v1198_v51 = vsel %vm605_vm11, %v1195_v10, %v1117_v18  ;;  %1571 = vperm.xlu0 %2918, %v1561_v25  }
 0x1f9   : > { %v1132_v21 = vsel %vm5543_vm5, %v4607_v13, %v1128_v49  ;;  %v1180_v13 = vsel %vm609_vm15, %v4272_v1, %v4657_v41  ;;  %v626_v1 = vsel %vm597_vm3, %v623_v32, %v5548_v29  ;;  %v2910_v41 = vunpack.i.h.bf16 %v2908_v28  ;;  %vm5551_vm3 = vmmov %vm5550_vm7  ;;  %v4961_v29 = vld [vmem:[%s5314_s4] sm:$0xff] }
 0x1fa   : > { %v1201_v38 = vsel %vm609_vm15, %v1198_v51, %v1132_v21  ;;  %v1183_v54 = vsel %vm613_vm10, %v1180_v13, %v4603_v33 }
 0x1fb   : > { %v1186_v59 = vsel %vm617_vm12, %v1183_v54, %v4689_v61  ;;  %v1301_v33 = vsel %vm5551_vm3, %v2895_v37, %v2910_v41  ;;  %v1562_v37 = vld [vmem:[%s5315_s5 + $0x10] sm:$0xff]  ;;  %v4968_v54 = vld [vmem:[%s5314_s4 + $0x8] sm:$0xff]  ;;  %vm1719_vm3 = vcmask 261120  }
 0x1fc   : > { %2340 = vmatmul.msk.f32.gmra.mxu1 %vm1027_vm14, %v4636_v47  ;;  %1576 = vperm.xlu2 %2917, %v1562_v37  }
 0x1fe   : > { %v1318_v26 = vpop.permute.xlu0 %1317 }
 0x1ff   : > { %v1322_v3 = vsel %vm5544_vm0, %v4538_v45, %v1318_v26  ;;  %v1204_v45 = vsel %vm613_vm10, %v1201_v38, %v1147_v24 }
 0x200   : > { %2346 = vmatpush.msk.msra.mxu2 %vm593_vm2, %v1322_v3  ;;  %v1158_v4 = vpop.permute.xlu1 %1157 }
 0x201   : > { %v1162_v34 = vsel %vm5547_vm6, %v4661_v11, %v1158_v4  ;;  %v5549_v11 = vld [vmem:[#allocation25_spill] sm:$0xff] }
 0x202   : > { %v1207_v9 = vsel %vm617_vm12, %v1204_v45, %v1162_v34  ;;  %v629_v62 = vsel %vm601_vm8, %v626_v1, %v5549_v11  ;;  %vm5554_vm8 = vmmov %vm5553_vm4 }
 0x203   : > { %1497 = vmatpush.msra.mxu2 %v1207_v9  ;;  %v632_v61 = vsel %vm605_vm11, %v629_v62, %v5552_v12 }
 0x204   : > { %2341 = vmatmul.msk.f32.gmra.mxu1 %vm1027_vm14, %v4677_v57  ;;  %v635_v53 = vsel %vm609_vm15, %v632_v61, %v5555_v63 }
 0x205   : > { %1498 = vmatpush.msra.mxu2 %v1186_v59  ;;  %v4975_v59 = vld [vmem:[%s5314_s4 + $0x10] sm:$0xff] }
 0x206   : > { %v2913_v50 = vpop.permute.xlu0 %2912 }
 0x207   : > { %v2914_v19 = vunpack.i.l.bf16 %v2913_v50  ;;  %1499 = vmatpush.msra.mxu2 %v1304_v48  ;;  %v2915_v17 = vunpack.i.h.bf16 %v2913_v50  ;;  %v4982_v50 = vld [vmem:[%s5314_s4 + $0x18] sm:$0xff] }
 0x209   : > { %1500 = vmatpush.msra.mxu2 %v1301_v33  ;;  %v1267_v8 = vsel %vm5553_vm4, %v2899_v16, %v2914_v19  ;;  %v1264_v36 = vsel %vm5554_vm8, %v2900_v30, %v2915_v17  ;;  %v5556_v16 = vld [vmem:[#allocation32_spill] sm:$0xff]  ;;  %v612_v30 = vsel %vm609_vm15, %v5557_v35, %v3817_v22  ;;  %vm5580_vm4 = vcmask 1031168  }
 0x20a   : > { %v638_v56 = vsel %vm613_vm10, %v635_v53, %v5556_v16  ;;  %v616_v55 = vsel %vm613_vm10, %v612_v30, %v4784_v43  ;;  %vm5558_vm10 = vcmask 523264   ;;  %vm5581_vm8 = vcmask 850944  }
 0x20b   : > { %1501 = vmatpush.msra.mxu2 %v1267_v8  ;;  %v641_v58 = vsel %vm617_vm12, %v638_v56, %v4691_v6  ;;  %vm5559_vm11 = vmmov %vm5558_vm10 }
 0x20c   : > { %2342 = vmatmul.msk.f32.gmra.mxu1 %vm1027_vm14, %v4712_v20  ;;  %vm5561_vm15 = vmmov %vm5558_vm10 }
 0x20d   : > { %1502 = vmatpush.msra.mxu2 %v1264_v36  ;;  %vm5563_vm13 = vmmov %vm5558_vm10 }
 0x20e   : > { %vm5564_vm9 = vmmov %vm5558_vm10 }
 0x20f   : > { %1503 = vmatpush.msra.mxu2 %v2904_v31  ;;  %v620_v31 = vsel %vm617_vm12, %v616_v55, %v4794_v15  ;;  %vm5560_vm12 = vmmov %vm5558_vm10 }
 0x210   : > { %vm5565_vm5 = vmmov %vm5564_vm9 }
 0x211   : > { %1504 = vmatpush.msra.mxu2 %v2905_v7  ;;  %vm5566_vm0 = vmmov %vm5565_vm5 }
 0x212   : > { %vm5567_vm1 = vmmov %vm5566_vm0 }
 0x213   : > { %1505 = vmatpush.msra.mxu2 %v641_v58  ;;  %vm5568_vm6 = vmmov %vm5566_vm0 }
 0x214   : > { %2343 = vmatmul.msk.f32.gmra.mxu1 %vm1027_vm14, %v4753_v39  ;;  %vm5569_vm7 = vmmov %vm5566_vm0 }
 0x215   : > { %1506 = vmatpush.msra.mxu2 %v620_v31 }
 0x216   : > { %2347 = vmatmul.msk.f32.vlgmr.msra.gmra.mxu2 %vm1027_vm14, %v4586_v14 }
 0x21c   : > { %2344 = vmatmul.msk.f32.gmra.mxu1 %vm1027_vm14, %v4803_v23 }
 0x21e   : > { %2348 = vmatmul.msk.f32.gmra.mxu2 %vm1027_vm14, %v4598_v52 }
 0x224   : > { %2345 = vmatmul.msk.f32.gmra.mxu1 %vm1027_vm14, %v4818_v0 }
 0x226   : > { %2349 = vmatmul.msk.f32.gmra.mxu2 %vm1027_vm14, %v4636_v47 }
 0x229   : > { %v4932_v7 = vpop.permute.xlu1 %1376  ;;  %v4942_v27 = vpop.permute.xlu0 %1366 }
 0x22e   : > { %2350 = vmatmul.msk.f32.gmra.mxu2 %vm1027_vm14, %v4677_v57  ;;  %v4934_v57 = vpop.permute.xlu2 %1371 }
 0x231   : > { %v4938_v15 = vpop.permute.xlu1 %1361  ;;  %v4954_v24 = vpop.permute.xlu0 %1341 }
 0x236   : > { %2351 = vmatmul.msk.f32.gmra.mxu2 %vm1027_vm14, %v4712_v20 }
 0x239   : > { %v1426_v22 = vpop.f32.mrf.mxu0 }
 0x23a   : > { %v1427_v34 = vadd.f32 %v1426_v22, %v4954_v24 }
 0x23c   : > { %v1532_v9 = vmax.f32 %v1427_v34, 0.0 }
 0x23e   : > { %2352 = vmatmul.msk.f32.gmra.mxu2 %vm1027_vm14, %v4753_v39  ;;  %v4940_v39 = vpop.permute.xlu2 %1356 }
 0x241   : > { %v1429_v14 = vpop.f32.mrf.mxu0 }
 0x242   : > { %v4948_v38 = vpop.permute.xlu1 %1351 }
 0x246   : > { %2353 = vmatmul.msk.f32.gmra.mxu2 %vm1027_vm14, %v4803_v23  ;;  %v4951_v28 = vpop.permute.xlu2 %1346 }
 0x247   : > { %v1430_v32 = vadd.f32 %v1429_v14, %v4951_v28 }
 0x249   : > { %v1432_v52 = vpop.f32.mrf.mxu0  ;;  %v1535_v45 = vmax.f32 %v1430_v32, 0.0  ;;  %v1695_v32 = vld [vmem:[%s5570_s18] sm:$0x7]  ;;  %s3193_s18 = smov 54  }
 0x24a   : > { %v1433_v13 = vadd.f32 %v1432_v52, %v4948_v38 }
 0x24c   : > { %v1538_v4 = vmax.f32 %v1433_v13, 0.0 }
 0x24e   : > { %2354 = vmatmul.msk.f32.gmra.mxu2 %vm1027_vm14, %v4818_v0  ;;  %vm5562_vm14 = vmmov %vm5558_vm10 }
 0x251   : > { %v1435_v6 = vpop.f32.mrf.mxu0 }
 0x252   : > { %v1436_v25 = vadd.f32 %v1435_v6, %v4940_v39 }
 0x254   : > { %v1541_v2 = vmax.f32 %v1436_v25, 0.0  ;;  %v1582_v25 = vpop.permute.xlu1 %1581 }
 0x259   : > { %v1438_v47 = vpop.f32.mrf.mxu0 }
 0x25a   : > { %v1439_v10 = vadd.f32 %v1438_v47, %v4938_v15 }
 0x25c   : > { %v1544_v26 = vmax.f32 %v1439_v10, 0.0 }
 0x261   : > { %v1441_v42 = vpop.f32.mrf.mxu0 }
 0x262   : > { %v1442_v46 = vadd.f32 %v1441_v42, %v4942_v27 }
 0x264   : > { %v1547_v51 = vmax.f32 %v1442_v46, 0.0 }
 0x269   : > { %v1444_v20 = vpop.f32.mrf.mxu0  ;;  %v4936_v43 = vpop.f32.mrf.mxu1 }
 0x26a   : > { %v1445_v23 = vadd.f32 %v1444_v20, %v4934_v57  ;;  %v1468_v58 = vadd.f32 %v4936_v43, %v4954_v24 }
 0x26c   : > { %v1550_v40 = vmax.f32 %v1445_v23, 0.0  ;;  %v1533_v14 = vmax.f32 %v1468_v58, 0.0 }
 0x271   : > { %v1447_v49 = vpop.f32.mrf.mxu0  ;;  %v1470_v0 = vpop.f32.mrf.mxu1 }
 0x272   : > { %v1448_v18 = vadd.f32 %v1447_v49, %v4932_v7  ;;  %v1471_v35 = vadd.f32 %v1470_v0, %v4951_v28 }
 0x274   : > { %v1553_v21 = vmax.f32 %v1448_v18, 0.0  ;;  %v1536_v31 = vmax.f32 %v1471_v35, 0.0  ;;  %v1698_v35 = vperm.slane %v1695_v32, 1 }
 0x276   : > { %1604 = vmatpush.msra.mxu3 %v1553_v21 }
 0x278   : > { %1605 = vmatpush.msra.mxu3 %v1550_v40 }
 0x279   : > { %v1473_v3 = vpop.f32.mrf.mxu1 }
 0x27a   : > { %1606 = vmatpush.msra.mxu3 %v1547_v51  ;;  %v1474_v16 = vadd.f32 %v1473_v3, %v4948_v38  ;;  %v1577_v3 = vpop.permute.xlu2 %1576 }
 0x27c   : > { %1607 = vmatpush.msra.mxu3 %v1544_v26  ;;  %v1539_v55 = vmax.f32 %v1474_v16, 0.0 }
 0x27e   : > { %1608 = vmatpush.msra.mxu3 %v1541_v2 }
 0x280   : > { %1609 = vmatpush.msra.mxu3 %v1538_v4 }
 0x281   : > { %v1476_v60 = vpop.f32.mrf.mxu1 }
 0x282   : > { %1610 = vmatpush.msra.mxu3 %v1535_v45  ;;  %v1477_v63 = vadd.f32 %v1476_v60, %v4940_v39  ;;  %v1567_v45 = vpop.permute.xlu1 %1566 }
 0x284   : > { %1611 = vmatpush.msra.mxu3 %v1532_v9  ;;  %v1542_v30 = vmax.f32 %v1477_v63, 0.0 }
 0x285   : > { %2355 = vmatmul.msk.f32.vlgmr.msra.gmra.mxu3 %vm5558_vm10, %v4961_v29  ;;  %vm5582_vm10 = vcmask 826368  }
 0x289   : > { %v1479_v1 = vpop.f32.mrf.mxu1 }
 0x28a   : > { %v1480_v8 = vadd.f32 %v1479_v1, %v4938_v15  ;;  %v1697_v1 = vperm.slane %v1695_v32, 0 }
 0x28c   : > { %v1545_v56 = vmax.f32 %v1480_v8, 0.0 }
 0x28d   : > { %2356 = vmatmul.msk.f32.gmra.mxu3 %vm5559_vm11, %v4968_v54  ;;  %vm1978_vm11 = vcmask 629760  }
 0x291   : > { %v1482_v41 = vpop.f32.mrf.mxu1 }
 0x292   : > { %v1483_v12 = vadd.f32 %v1482_v41, %v4942_v27 }
 0x294   : > { %v1548_v53 = vmax.f32 %v1483_v12, 0.0 }
 0x295   : > { %2357 = vmatmul.msk.f32.gmra.mxu3 %vm5560_vm12, %v4975_v59  ;;  %vm5583_vm12 = vcmask 1039360  }
 0x299   : > { %v1485_v11 = vpop.f32.mrf.mxu1  ;;  %v1508_v62 = vpop.f32.mrf.mxu2 }
 0x29a   : > { %v1486_v17 = vadd.f32 %v1485_v11, %v4934_v57 }
 0x29c   : > { %v1551_v36 = vmax.f32 %v1486_v17, 0.0 }
 0x29d   : > { %2358 = vmatmul.msk.f32.gmra.mxu3 %vm5561_vm15, %v4982_v50  ;;  %vm1962_vm15 = vcmask 637952  }
 0x2a1   : > { %v1488_v48 = vpop.f32.mrf.mxu1  ;;  %v1511_v19 = vpop.f32.mrf.mxu2 }
 0x2a2   : > { %v1489_v33 = vadd.f32 %v1488_v48, %v4932_v7  ;;  %v1512_v51 = vadd.f32 %v1511_v19, %v4951_v28  ;;  %v1715_v48 = vld [vmem:[#allocation8] sm:$0xff]  ;;  %v1716_v19 = vld [vmem:[#allocation8 + $0x8] sm:$0xff] }
 0x2a4   : > { %v1554_v61 = vmax.f32 %v1489_v33, 0.0  ;;  %v1537_v26 = vmax.f32 %v1512_v51, 0.0  ;;  %v1717_v33 = vld [vmem:[#allocation8 + $0x10] sm:$0xff] }
 0x2a6   : > { %1633 = vmatpush.msrb.mxu3 %v1554_v61 }
 0x2a8   : > { %1634 = vmatpush.msrb.mxu3 %v1551_v36 }
 0x2a9   : > { %v1514_v37 = vpop.f32.mrf.mxu2 }
 0x2aa   : > { %1635 = vmatpush.msrb.mxu3 %v1548_v53  ;;  %v1515_v21 = vadd.f32 %v1514_v37, %v4948_v38 }
 0x2ac   : > { %1636 = vmatpush.msrb.mxu3 %v1545_v56 }
 0x2ae   : > { %1637 = vmatpush.msrb.mxu3 %v1542_v30 }
 0x2b0   : > { %1638 = vmatpush.msrb.mxu3 %v1539_v55 }
 0x2b1   : > { %v1517_v22 = vpop.f32.mrf.mxu2 }
 0x2b2   : > { %1639 = vmatpush.msrb.mxu3 %v1536_v31  ;;  %v1518_v18 = vadd.f32 %v1517_v22, %v4940_v39 }
 0x2b4   : > { %1640 = vmatpush.msrb.mxu3 %v1533_v14 }
 0x2b5   : > { %2359 = vmatmul.msk.f32.vlgmr.msrb.gmra.mxu3 %vm5562_vm14, %v4961_v29  ;;  %vm5584_vm14 = vcmask 1022976  }
 0x2b9   : > { %v1520_v52 = vpop.f32.mrf.mxu2 }
 0x2ba   : > { %v1521_v0 = vadd.f32 %v1520_v52, %v4938_v15 }
 0x2bc   : > { %v1546_v10 = vmax.f32 %v1521_v0, 0.0 }
 0x2bd   : > { %2360 = vmatmul.msk.f32.gmra.mxu3 %vm5563_vm13, %v4968_v54  ;;  %vm5585_vm13 = vcmask 1014784  }
 0x2c1   : > { %v1523_v6 = vpop.f32.mrf.mxu2 }
 0x2c2   : > { %v1524_v23 = vadd.f32 %v1523_v6, %v4942_v27  ;;  %v1540_v27 = vmax.f32 %v1515_v21, 0.0 }
 0x2c4   : > { %v1549_v40 = vmax.f32 %v1524_v23, 0.0 }
 0x2c5   : > { %2361 = vmatmul.msk.f32.gmra.mxu3 %vm5564_vm9, %v4975_v59  ;;  %vm5586_vm9 = vcmask 842752  }
 0x2c9   : > { %v1526_v47 = vpop.f32.mrf.mxu2 }
 0x2ca   : > { %v1527_v20 = vadd.f32 %v1526_v47, %v4934_v57  ;;  %v1543_v57 = vmax.f32 %v1518_v18, 0.0  ;;  %v1699_v18 = vperm.slane %v1695_v32, 2 }
 0x2cc   : > { %v1552_v46 = vmax.f32 %v1527_v20, 0.0 }
 0x2cd   : > { %2362 = vmatmul.msk.f32.gmra.mxu3 %vm5565_vm5, %v4982_v50  ;;  %vm5587_vm5 = vcmask 834560  }
 0x2d1   : > { %v1529_v42 = vpop.f32.mrf.mxu2 }
 0x2d2   : > { %v1530_v43 = vadd.f32 %v1529_v42, %v4932_v7  ;;  %v1509_v7 = vadd.f32 %v1508_v62, %v4954_v24  ;;  %v1572_v24 = vpop.permute.xlu0 %1571 }
 0x2d4   : > { %v1555_v49 = vmax.f32 %v1530_v43, 0.0  ;;  %v1534_v15 = vmax.f32 %v1509_v7, 0.0 }
 0x2d6   : > { %1662 = vmatpush.msra.mxu3 %v1555_v49 }
 0x2d8   : > { %1663 = vmatpush.msra.mxu3 %v1552_v46 }
 0x2da   : > { %1664 = vmatpush.msra.mxu3 %v1549_v40 }
 0x2dc   : > { %1665 = vmatpush.msra.mxu3 %v1546_v10 }
 0x2de   : > { %1666 = vmatpush.msra.mxu3 %v1543_v57 }
 0x2e0   : > { %1667 = vmatpush.msra.mxu3 %v1540_v27 }
 0x2e2   : > { %1668 = vmatpush.msra.mxu3 %v1537_v26 }
 0x2e4   : > { %1669 = vmatpush.msra.mxu3 %v1534_v15 }
 0x2e5   : > { %2363 = vmatmul.msk.f32.vlgmr.msra.gmra.mxu3 %vm5566_vm0, %v4961_v29  ;;  %vm5588_vm0 = vcmask 818176  }
 0x2ed   : > { %2364 = vmatmul.msk.f32.gmra.mxu3 %vm5567_vm1, %v4968_v54  ;;  %vm1946_vm1 = vcmask 646144  }
 0x2f5   : > { %2365 = vmatmul.msk.f32.gmra.mxu3 %vm5568_vm6, %v4975_v59  ;;  %vm5589_vm6 = vcmask 654336  }
 0x2fd   : > { %2366 = vmatmul.msk.f32.gmra.mxu3 %vm5569_vm7, %v4982_v50  ;;  %vm1994_vm7 = vcmask 621568  }
 0x308   : > { %v1613_v39 = vpop.f32.mrf.mxu3 }
 0x309   : > { %v1614_v60 = vadd.f32 %v1613_v39, %v1567_v45 }
 0x30b   : > { %v1683_v59 = vmax.f32 %v1614_v60, 0.0 }
 0x30d   : > { %v1703_v50 = vmul.f32 %v1697_v1, %v1683_v59 }
 0x310   : > { %v1616_v38 = vpop.f32.mrf.mxu3 }
 0x311   : > { %v1617_v4 = vadd.f32 %v1616_v38, %v1572_v24  ;;  %v1718_v38 = vld [vmem:[#allocation8 + $0x18] sm:$0x1] }
 0x313   : > { %v1686_v54 = vmax.f32 %v1617_v4, 0.0 }
 0x315   : > { %v1706_v62 = vmul.f32 %v1697_v1, %v1686_v54 }
 0x318   : > { %v1619_v28 = vpop.f32.mrf.mxu3 }
 0x319   : > { %v1620_v13 = vadd.f32 %v1619_v28, %v1577_v3 }
 0x31b   : > { %v1689_v9 = vmax.f32 %v1620_v13, 0.0 }
 0x31d   : > { %v1709_v11 = vmul.f32 %v1697_v1, %v1689_v9 }
 0x320   : > { %v1622_v2 = vpop.f32.mrf.mxu3 }
 0x321   : > { %v1623_v34 = vadd.f32 %v1622_v2, %v1582_v25 }
 0x323   : > { %v1692_v29 = vmax.f32 %v1623_v34, 0.0 }
 0x325   : > { %v1712_v41 = vmul.f32 %v1697_v1, %v1692_v29 }
 0x327   : > { %1744 = vmatpush.msrb.mxu0 %v1712_v41 }
 0x329   : > { %1745 = vmatpush.msrb.mxu0 %v1709_v11 }
 0x32b   : > { %1746 = vmatpush.msrb.mxu0 %v1706_v62 }
 0x32d   : > { %1747 = vmatpush.msrb.mxu0 %v1703_v50 }
 0x32e   : > { %2367 = vmatmul.msk.f32.vlgmr.msrb.gmra.mxu0 %vm1719_vm3, %v1715_v48 }
 0x336   : > { %2368 = vmatmul.msk.f32.gmra.mxu0 %vm1719_vm3, %v1716_v19 }
 0x338   : > { %v1642_v17 = vpop.f32.mrf.mxu3 }
 0x339   : > { %v1643_v37 = vadd.f32 %v1642_v17, %v1567_v45 }
 0x33b   : > { %v1684_v55 = vmax.f32 %v1643_v37, 0.0 }
 0x33d   : > { %v1704_v14 = vmul.f32 %v1698_v35, %v1684_v55 }
 0x33e   : > { %2369 = vmatmul.msk.f32.gmra.mxu0 %vm1719_vm3, %v1717_v33 }
 0x340   : > { %v1645_v12 = vpop.f32.mrf.mxu3 }
 0x341   : > { %v1646_v63 = vadd.f32 %v1645_v12, %v1572_v24 }
 0x343   : > { %v1687_v30 = vmax.f32 %v1646_v63, 0.0 }
 0x345   : > { %v1707_v22 = vmul.f32 %v1698_v35, %v1687_v30 }
 0x346   : > { %2370 = vmatmul.msk.f32.gmra.mxu0 %vm1719_vm3, %v1718_v38 }
 0x348   : > { %v1648_v61 = vpop.f32.mrf.mxu3 }
 0x349   : > { %v1649_v8 = vadd.f32 %v1648_v61, %v1577_v3 }
 0x34b   : > { %v1690_v16 = vmax.f32 %v1649_v8, 0.0 }
 0x34d   : > { %v1710_v31 = vmul.f32 %v1698_v35, %v1690_v16 }
 0x350   : > { %v1651_v36 = vpop.f32.mrf.mxu3 }
 0x351   : > { %v1652_v53 = vadd.f32 %v1651_v36, %v1582_v25 }
 0x353   : > { %v1693_v56 = vmax.f32 %v1652_v53, 0.0 }
 0x355   : > { %v1713_v58 = vmul.f32 %v1698_v35, %v1693_v56 }
 0x357   : > { %1773 = vmatpush.msrb.mxu1 %v1713_v58 }
 0x359   : > { %1774 = vmatpush.msrb.mxu1 %v1710_v31 }
 0x35b   : > { %1775 = vmatpush.msrb.mxu1 %v1707_v22 }
 0x35d   : > { %1776 = vmatpush.msrb.mxu1 %v1704_v14 }
 0x35e   : > { %2371 = vmatmul.msk.f32.vlgmr.msrb.gmra.mxu1 %vm1719_vm3, %v1715_v48 }
 0x366   : > { %2372 = vmatmul.msk.f32.gmra.mxu1 %vm1719_vm3, %v1716_v19 }
 0x368   : > { %v1671_v52 = vpop.f32.mrf.mxu3 }
 0x369   : > { %v1672_v49 = vadd.f32 %v1671_v52, %v1567_v45 }
 0x36b   : > { %v1685_v10 = vmax.f32 %v1672_v49, 0.0 }
 0x36d   : > { %v1705_v7 = vmul.f32 %v1699_v18, %v1685_v10 }
 0x36e   : > { %2373 = vmatmul.msk.f32.gmra.mxu1 %vm1719_vm3, %v1717_v33 }
 0x370   : > { %v1674_v6 = vpop.f32.mrf.mxu3 }
 0x371   : > { %v1675_v43 = vadd.f32 %v1674_v6, %v1572_v24 }
 0x373   : > { %v1688_v40 = vmax.f32 %v1675_v43, 0.0 }
 0x375   : > { %v1708_v57 = vmul.f32 %v1699_v18, %v1688_v40 }
 0x376   : > { %2374 = vmatmul.msk.f32.gmra.mxu1 %vm1719_vm3, %v1718_v38 }
 0x378   : > { %v1677_v47 = vpop.f32.mrf.mxu3 }
 0x379   : > { %v1678_v42 = vadd.f32 %v1677_v47, %v1577_v3 }
 0x37b   : > { %v1691_v0 = vmax.f32 %v1678_v42, 0.0 }
 0x37d   : > { %v1711_v51 = vmul.f32 %v1699_v18, %v1691_v0 }
 0x380   : > { %v1680_v20 = vpop.f32.mrf.mxu3 }
 0x381   : > { %v1681_v23 = vadd.f32 %v1680_v20, %v1582_v25 }
 0x383   : > { %v1694_v46 = vmax.f32 %v1681_v23, 0.0 }
 0x385   : > { %v1714_v21 = vmul.f32 %v1699_v18, %v1694_v46 }
 0x387   : > { %1802 = vmatpush.msrb.mxu2 %v1714_v21 }
 0x389   : > { %1803 = vmatpush.msrb.mxu2 %v1711_v51 }
 0x38b   : > { %1804 = vmatpush.msrb.mxu2 %v1708_v57 }
 0x38d   : > { %1805 = vmatpush.msrb.mxu2 %v1705_v7 }
 0x38e   : > { %2375 = vmatmul.msk.f32.vlgmr.msrb.gmra.mxu2 %vm1719_vm3, %v1715_v48 }
 0x396   : > { %2376 = vmatmul.msk.f32.gmra.mxu2 %vm1719_vm3, %v1716_v19 }
 0x39e   : > { %2377 = vmatmul.msk.f32.gmra.mxu2 %vm1719_vm3, %v1717_v33 }
 0x3a6   : > { %2378 = vmatmul.msk.f32.gmra.mxu2 %vm1719_vm3, %v1718_v38 }
 0x3ab   : > { %v5030_v27 = vpop.f32.mrf.mxu0 }
 0x3ac   : > { %v1833_v26 = vrot.slane %v5030_v27, 2  ;;  %v1822_v15 = vrot.slane %v5030_v27, 1  ;;  %v1844_v39 = vrot.slane %v5030_v27, 3  ;;  %v1866_v25 = vrot.slane %v5030_v27, 5 }
 0x3ad   : > { %v1855_v28 = vrot.slane %v5030_v27, 4  ;;  %v1877_v3 = vrot.slane %v5030_v27, 6  ;;  %v1888_v24 = vrot.slane %v5030_v27, 7 }
 0x3ae   : > { %1835 = vrot.lane.b32.xlu1 %v1833_v26, %s5571_s13  ;;  %1824 = vrot.lane.b32.xlu2 %v1822_v15, %s5572_s21 }
 0x3af   : > { %1846 = vrot.lane.b32.xlu0 %v1844_v39, %s5573_s20 }
 0x3b3   : > { %v1752_v13 = vpop.f32.mrf.mxu0 }
 0x3b4   : > { %v1910_v2 = vrot.slane %v1752_v13, 1  ;;  %v1969_v32 = vrot.slane %v1752_v13, 5  ;;  %v1922_v4 = vrot.slane %v1752_v13, 2  ;;  %v1985_v34 = vrot.slane %v1752_v13, 6 }
 0x3b5   : > { %v1937_v45 = vrot.slane %v1752_v13, 3  ;;  %v2001_v60 = vrot.slane %v1752_v13, 7  ;;  %v1953_v9 = vrot.slane %v1752_v13, 4 }
 0x3b6   : > { %1868 = vrot.lane.b32.xlu1 %v1866_v25, %s5574_s25  ;;  %1857 = vrot.lane.b32.xlu2 %v1855_v28, %s5575_s17 }
 0x3b7   : > { %1879 = vrot.lane.b32.xlu0 %v1877_v3, %s5576_s26 }
 0x3bb   : > { %v5057_v29 = vpop.f32.mrf.mxu0 }
 0x3bc   : > { %v2032_v59 = vrot.slane %v5057_v29, 1  ;;  %v2048_v50 = vrot.slane %v5057_v29, 2  ;;  %v2064_v17 = vrot.slane %v5057_v29, 3  ;;  %v2080_v61 = vrot.slane %v5057_v29, 4 }
 0x3bd   : > { %v2095_v15 = vrot.slane %v5057_v29, 5 }
 0x3be   : > { %1901 = vrot.lane.b32.xlu1 %v1752_v13, %s5577_s8  ;;  %1890 = vrot.lane.b32.xlu2 %v1888_v24, %s5578_s22  ;;  %v2111_v13 = vrot.slane %v5057_v29, 6 }
 0x3bf   : > { %1912 = vrot.lane.b32.xlu0 %v1910_v2, %s5579_s24 }
 0x3c6   : > { %1972 = vrot.lane.b32.xlu1 %v1969_v32, %s3188_s6  ;;  %1925 = vrot.lane.b32.xlu2 %v1922_v4, %s5498_s27 }
 0x3ce   : > { %1988 = vrot.lane.b32.xlu1 %v1985_v34, %s3189_s29  ;;  %1940 = vrot.lane.b32.xlu2 %v1937_v45, %s3190_s15 }
 0x3d6   : > { %2004 = vrot.lane.b32.xlu1 %v2001_v60, %s3176_s28  ;;  %1956 = vrot.lane.b32.xlu2 %v1953_v9, %s3191_s10  ;;  %v2127_v60 = vrot.slane %v5057_v29, 7 }
 0x3db   : > { %v5059_v1 = vpop.f32.mrf.mxu1 }
 0x3dc   : > { %v1823_v54 = vrot.slane %v5059_v1, 1  ;;  %v1834_v41 = vrot.slane %v5059_v1, 2  ;;  %v1856_v11 = vrot.slane %v5059_v1, 4  ;;  %v1867_v62 = vrot.slane %v5059_v1, 5 }
 0x3dd   : > { %v1889_v48 = vrot.slane %v5059_v1, 7  ;;  %v1845_v63 = vrot.slane %v5059_v1, 3  ;;  %v1878_v56 = vrot.slane %v5059_v1, 6 }
 0x3de   : > { %2019 = vrot.lane.b32.xlu1 %v5057_v29, %s3192_s23  ;;  %1826 = vrot.lane.b32.xlu0 %v1823_v54, %s5572_s21  ;;  %s3194_s21 = smov 53  }
 0x3df   : > { %1837 = vrot.lane.b32.xlu2 %v1834_v41, %s5571_s13  ;;  %s3195_s13 = smov 52  }
 0x3e3   : > { %v1781_v19 = vpop.f32.mrf.mxu1 }
 0x3e4   : > { %v1923_v33 = vrot.slane %v1781_v19, 2  ;;  %v1970_v12 = vrot.slane %v1781_v19, 5  ;;  %v1938_v8 = vrot.slane %v1781_v19, 3  ;;  %v1986_v36 = vrot.slane %v1781_v19, 6 }
 0x3e5   : > { %v1954_v53 = vrot.slane %v1781_v19, 4  ;;  %v2002_v37 = vrot.slane %v1781_v19, 7  ;;  %v1911_v31 = vrot.slane %v1781_v19, 1 }
 0x3e6   : > { %2035 = vrot.lane.b32.xlu1 %v2032_v59, %s3193_s18  ;;  %1859 = vrot.lane.b32.xlu0 %v1856_v11, %s5575_s17  ;;  %s3200_s17 = smov 28  }
 0x3e7   : > { %1870 = vrot.lane.b32.xlu2 %v1867_v62, %s5574_s25  ;;  %s3196_s25 = smov 32   ;;  %v1758_v62 = vpop.f32.mrf.mxu0 }
 0x3eb   : > { %v5093_v35 = vpop.f32.mrf.mxu1 }
 0x3ec   : > { %v2033_v55 = vrot.slane %v5093_v35, 1  ;;  %v2049_v47 = vrot.slane %v5093_v35, 2  ;;  %v2065_v23 = vrot.slane %v5093_v35, 3  ;;  %v2081_v40 = vrot.slane %v5093_v35, 4 }
 0x3ed   : > { %v2096_v26 = vrot.slane %v5093_v35, 5  ;;  %v2112_v3 = vrot.slane %v5093_v35, 6  ;;  %v2128_v45 = vrot.slane %v5093_v35, 7 }
 0x3ee   : > { %2051 = vrot.lane.b32.xlu1 %v2048_v50, %s3194_s21  ;;  %1892 = vrot.lane.b32.xlu0 %v1889_v48, %s5578_s22  ;;  %s5594_s22 = smov 106  }
 0x3ef   : > { %1903 = vrot.lane.b32.xlu2 %v1781_v19, %s5577_s8  ;;  %s5593_s8 = sld [smem:[#allocation16_spill]] }
 0x3f3   : > { %v1787_v50 = vpop.f32.mrf.mxu1 }
 0x3f6   : > { %2067 = vrot.lane.b32.xlu1 %v2064_v17, %s3195_s13  ;;  %1927 = vrot.lane.b32.xlu0 %v1923_v33, %s5498_s27 }
 0x3f7   : > { %1974 = vrot.lane.b32.xlu2 %v1970_v12, %s3188_s6 }
 0x3fe   : > { %2083 = vrot.lane.b32.xlu1 %v2080_v61, %s3196_s25  ;;  %1942 = vrot.lane.b32.xlu0 %v1938_v8, %s3190_s15 }
 0x3ff   : > { %1990 = vrot.lane.b32.xlu2 %v1986_v36, %s3189_s29 }
 0x406   : > { %1848 = vrot.lane.b32.xlu1 %v1845_v63, %s5573_s20  ;;  %1958 = vrot.lane.b32.xlu0 %v1954_v53, %s3191_s10  ;;  %s3199_s20 = smov 29  }
 0x407   : > { %2006 = vrot.lane.b32.xlu2 %v2002_v37, %s3176_s28 }
 0x408   : > { %v5090_v16 = vpop.permute.xlu2 %1824 }
 0x40e   : > { %1881 = vrot.lane.b32.xlu1 %v1878_v56, %s5576_s26  ;;  %s2162_s26 = sld [smem:[#allocation2]] }
 0x40f   : > { %2021 = vrot.lane.b32.xlu2 %v5093_v35, %s3192_s23 }
 0x410   : > { %v5098_v30 = vpop.permute.xlu2 %1857 }
 0x411   : > { %v1807_v58 = vpop.f32.mrf.mxu2 }
 0x416   : > { %1914 = vrot.lane.b32.xlu1 %v1911_v31, %s5579_s24  ;;  %s2380_s24 = sshll.u32 %s3128_s7, 1  ;;  %s2181_s7 = scalar_lea.sflag [#allocation5], %s3419_s12 }
 0x417   : > { %2037 = vrot.lane.b32.xlu2 %v2033_v55, %s3193_s18 }
 0x418   : > { %v5103_v22 = vpop.permute.xlu2 %1890 }
 0x419   : > { %v1809_v14 = vpop.f32.mrf.mxu2 }
 0x41a   : > { %v1971_v52 = vrot.slane %v1809_v14, 5  ;;  %v1924_v6 = vrot.slane %v1809_v14, 2  ;;  %v1987_v43 = vrot.slane %v1809_v14, 6  ;;  %v1939_v49 = vrot.slane %v1809_v14, 3 }
 0x41b   : > { %v2003_v18 = vrot.slane %v1809_v14, 7  ;;  %v1955_v21 = vrot.slane %v1809_v14, 4 }
 0x41c   : > { %1976 = vrot.lane.b32.xlu0 %v1971_v52, %s3188_s6  ;;  %s2189_s6 = sadd.s32 %s5593_s8, %s2380_s24 }
 0x41e   : > { %1929 = vrot.lane.b32.xlu1 %v1924_v6, %s5498_s27  ;;  %s3198_s27 = smov 30  }
 0x41f   : > { %2053 = vrot.lane.b32.xlu2 %v2049_v47, %s3194_s21 }
 0x420   : > { %v1836_v42 = vpop.permute.xlu1 %1835  ;;  %v5109_v20 = vpop.permute.xlu2 %1925 }
 0x421   : > { %v5123_v57 = vpop.f32.mrf.mxu2  ;;  %v5125_v7 = vpop.permute.xlu0 %1846 }
 0x422   : > { %v2034_v25 = vrot.slane %v5123_v57, 1  ;;  %v2050_v4 = vrot.slane %v5123_v57, 2  ;;  %v2066_v59 = vrot.slane %v5123_v57, 3  ;;  %v2082_v61 = vrot.slane %v5123_v57, 4 }
 0x423   : > { %v2097_v56 = vrot.slane %v5123_v57, 5  ;;  %v2113_v35 = vrot.slane %v5123_v57, 6  ;;  %v2129_v31 = vrot.slane %v5123_v57, 7 }
 0x424   : > { %1992 = vrot.lane.b32.xlu0 %v1987_v43, %s3189_s29  ;;  %s2327_s29 = sshll.u32 %s3419_s12, 1 }
 0x426   : > { %1944 = vrot.lane.b32.xlu1 %v1939_v49, %s3190_s15  ;;  %s2381_s15 = sshll.u32 %s2189_s6, 1 }
 0x427   : > { %2069 = vrot.lane.b32.xlu2 %v2065_v23, %s3195_s13 }
 0x428   : > { %v1869_v0 = vpop.permute.xlu1 %1868  ;;  %v5115_v46 = vpop.permute.xlu2 %1940 }
 0x429   : > { %v5138_v24 = vpop.permute.xlu0 %1879  ;;  %v1815_v47 = vpop.f32.mrf.mxu2 }
 0x42c   : > { %2008 = vrot.lane.b32.xlu0 %v2003_v18, %s3176_s28  ;;  %s3197_s28 = smov 31  }
 0x42e   : > { %1960 = vrot.lane.b32.xlu1 %v1955_v21, %s3191_s10 }
 0x42f   : > { %2085 = vrot.lane.b32.xlu2 %v2081_v40, %s3196_s25 }
 0x430   : > { %v1902_v10 = vpop.permute.xlu1 %1901  ;;  %v5121_v51 = vpop.permute.xlu2 %1956 }
 0x431   : > { %v5150_v9 = vpop.permute.xlu0 %1912 }
 0x434   : > { %2023 = vrot.lane.b32.xlu0 %v5123_v57, %s3192_s23 }
 0x436   : > { %2098 = vrot.lane.b32.xlu1 %v2095_v15, %s3197_s28 }
 0x437   : > { %2100 = vrot.lane.b32.xlu2 %v2096_v26, %s3197_s28 }
 0x438   : > { %v1973_v39 = vpop.permute.xlu1 %1972 }
 0x439   : > { %v1838_v38 = vpop.permute.xlu2 %1837 }
 0x43a   : > { %v1839_v28 = vsel %vm5580_vm4, %v1836_v42, %v1838_v38  ;;  %vm5590_vm4 = vmmov %vm5589_vm6 }
 0x43c   : > { %2039 = vrot.lane.b32.xlu0 %v2034_v25, %s3193_s18  ;;  %s5595_s18 = sld [smem:[#allocation52_spill]] }
 0x43e   : > { %2114 = vrot.lane.b32.xlu1 %v2111_v13, %s3198_s27 }
 0x43f   : > { %2116 = vrot.lane.b32.xlu2 %v2112_v3, %s3198_s27 }
 0x440   : > { %v5142_v2 = vpop.permute.xlu1 %1988 }
 0x441   : > { %v1871_v32 = vpop.permute.xlu2 %1870 }
 0x442   : > { %v1872_v34 = vsel %vm5581_vm8, %v1869_v0, %v1871_v32  ;;  %vm2025_vm8 = vcmask 449536  }
 0x444   : > { %2055 = vrot.lane.b32.xlu0 %v2050_v4, %s3194_s21  ;;  %s2193_s21 = scalar_lea.hbm %s5595_s18, %s2381_s15 }
 0x446   : > { %2130 = vrot.lane.b32.xlu1 %v2127_v60, %s3199_s20 }
 0x447   : > { %2132 = vrot.lane.b32.xlu2 %v2128_v45, %s3199_s20 }
 0x448   : > { %v5153_v54 = vpop.permute.xlu1 %2004 }
 0x449   : > { %v1904_v41 = vpop.permute.xlu2 %1903 }
 0x44a   : > { %v1905_v11 = vsel %vm5582_vm10, %v1902_v10, %v1904_v41  ;;  %vm5591_vm10 = vcmask 457728  }
 0x44c   : > { %2071 = vrot.lane.b32.xlu0 %v2066_v59, %s3195_s13 }
 0x44e   : > { %2146 = vrot.lane.b32.xlu1 %v1758_v62, %s3200_s17 }
 0x44f   : > { %2148 = vrot.lane.b32.xlu2 %v1787_v50, %s3200_s17 }
 0x450   : > { %v5160_v29 = vpop.permute.xlu1 %2019  ;;  %v1827_v48 = vpop.permute.xlu0 %1826 }
 0x451   : > { %v1828_v19 = vsel %vm5583_vm12, %v5090_v16, %v1827_v48  ;;  %v1832_v17 = vadd.f32 %v1827_v48, %v5059_v1  ;;  %v1975_v33 = vpop.permute.xlu2 %1974  ;;  %vm2057_vm12 = vcmask 433152  }
 0x452   : > { %v1831_v12 = vadd.f32 %v1828_v19, %v5030_v27  ;;  %v1979_v8 = vsel %vm1978_vm11, %v1973_v39, %v1975_v33 }
 0x453   : > { %v1843_v36 = vadd.f32 %v1838_v38, %v1832_v17 }
 0x454   : > { %2087 = vrot.lane.b32.xlu0 %v2082_v61, %s3196_s25  ;;  %v1842_v63 = vadd.f32 %v1839_v28, %v1831_v12  ;;  %s400_s25 = scalar_lea.vmem [#allocation9], %s2327_s29 }
 0x458   : > { %v5169_v53 = vpop.permute.xlu1 %2035  ;;  %v1860_v37 = vpop.permute.xlu0 %1859 }
 0x459   : > { %v5173_v16 = vpop.permute.xlu2 %1990  ;;  %v1861_v21 = vsel %vm5585_vm13, %v5098_v30, %v1860_v37  ;;  %vm5592_vm13 = vmmov %vm5591_vm10 }
 0x45c   : > { %2102 = vrot.lane.b32.xlu0 %v2097_v56, %s3197_s28  ;;  %s2195_s28 = sshll.u32 %s400_s25, 4  ;;  %s2196_s28 = int_to_ptr.vmem [resolvable:$true] %s2195_s28 }
 0x460   : > { %v5175_v1 = vpop.permute.xlu1 %2051  ;;  %v1893_v27 = vpop.permute.xlu0 %1892 }
 0x461   : > { %v5182_v14 = vpop.permute.xlu2 %2006  ;;  %v1894_v3 = vsel %vm5587_vm5, %v5103_v22, %v1893_v27  ;;  %vm2136_vm5 = vcmask 236544  }
 0x464   : > { %2118 = vrot.lane.b32.xlu0 %v2113_v35, %s3198_s27  ;;  %s2197_s27 = sshll.u32 %s2193_s21, 4  ;;  %s2198_s27 = int_to_ptr.hbm [resolvable:$true] %s2197_s27 }
 0x468   : > { %v5179_v58 = vpop.permute.xlu1 %2067  ;;  %v1928_v55 = vpop.permute.xlu0 %1927 }
 0x469   : > { %v5188_v42 = vpop.permute.xlu2 %2021 }
 0x46c   : > { %2134 = vrot.lane.b32.xlu0 %v2129_v31, %s3199_s20  ;;  %s3024_s20 = sshra.s32 %s2198_s27, 4  ;;  %s3025_s20 = int_to_ptr.hbm [resolvable:$true] %s3024_s20 }
 0x46d   : > { %p3031_p12 = scmp.lt.s32.totalorder %s3025_s20, %s5595_s18 }
 0x470   : > { %v5185_v52 = vpop.permute.xlu1 %2083  ;;  %v1943_v6 = vpop.permute.xlu0 %1942 }
 0x471   : > { %v5199_v39 = vpop.permute.xlu2 %2037  ;;  %v1947_v62 = vsel %vm1946_vm1, %v5115_v46, %v1943_v6  ;;  %v2010_v46 = vsel %vm5591_vm10, %v5153_v54, %v5182_v14 }
 0x474   : > { %2150 = vrot.lane.b32.xlu0 %v1815_v47, %s3200_s17  ;;  %s3026_s17 = scalar_lea.hbm %s3025_s20, 2 }
 0x475   : > { %p3027_p1 = scmp.ne.s32.totalorder %s3025_s20, %s3026_s17 }
 0x477   : > { %p3028_p3 = pnand %p3027_p1, %p3367_p4 }
 0x478   : > { %v1849_v43 = vpop.permute.xlu1 %1848  ;;  %v5190_v23 = vpop.permute.xlu0 %1958 }
 0x479   : > { %v1850_v49 = vsel %vm5584_vm14, %v5125_v7, %v1849_v43  ;;  %v1854_v0 = vadd.f32 %v1849_v43, %v1843_v36  ;;  %v1963_v18 = vsel %vm1962_vm15, %v5121_v51, %v5190_v23  ;;  %v5205_v60 = vpop.permute.xlu2 %2053  ;;  %vm2073_vm14 = vcmask 424960   ;;  %p3029_p8 = pneg %p3028_p3 }
 0x47a   : > { %v1853_v40 = vadd.f32 %v1850_v49, %v1842_v63  ;;  %v2058_v54 = vsel %vm2057_vm12, %v5175_v1, %v5205_v60 }
 0x47b   : > { %v1865_v10 = vadd.f32 %v1860_v37, %v1854_v0  ;;  %v2026_v37 = vsel %vm2025_vm8, %v5160_v29, %v5188_v42 }
 0x47c   : > { %v1864_v57 = vadd.f32 %v1861_v21, %v1853_v40 }
 0x47d   : > { %v1876_v26 = vadd.f32 %v1871_v32, %v1865_v10 }
 0x47e   : > { %v1875_v15 = vadd.f32 %v1872_v34, %v1864_v57 }
 0x480   : > { %v1882_v38 = vpop.permute.xlu1 %1881 }
 0x481   : > { %v1883_v25 = vsel %vm5586_vm9, %v5138_v24, %v1882_v38  ;;  %v1887_v7 = vadd.f32 %v1882_v38, %v1876_v26  ;;  %v1931_v24 = vsel %vm5589_vm6, %v5109_v20, %v1928_v55  ;;  %v2070_v61 = vpop.permute.xlu2 %2069  ;;  %v1995_v20 = vsel %vm1994_vm7, %v5142_v2, %v5173_v16 }
 0x482   : > { %v1886_v28 = vadd.f32 %v1883_v25, %v1875_v15  ;;  %v2074_v29 = vsel %vm2073_vm14, %v5179_v58, %v2070_v61  ;;  %vm2120_vm9 = vcmask 244736  }
 0x483   : > { %v1898_v51 = vadd.f32 %v1893_v27, %v1887_v7 }
 0x484   : > { %v1897_v13 = vadd.f32 %v1894_v3, %v1886_v28 }
 0x485   : > { %v1909_v4 = vadd.f32 %v1904_v41, %v1898_v51 }
 0x486   : > { %v1908_v45 = vadd.f32 %v1905_v11, %v1897_v13 }
 0x488   : > { %v1915_v30 = vpop.permute.xlu1 %1914 }
 0x489   : > { %v1916_v32 = vsel %vm5588_vm0, %v5150_v9, %v1915_v30  ;;  %v1920_v11 = vadd.f32 %v1915_v30, %v1909_v4  ;;  %v2086_v47 = vpop.permute.xlu2 %2085  ;;  %vm2152_vm0 = vcmask 228352  }
 0x48a   : > { %v1919_v34 = vadd.f32 %v1916_v32, %v1908_v45  ;;  %v2089_v0 = vsel %vm1719_vm3, %v5185_v52, %v2086_v47 }
 0x48c   : > { %v1935_v59 = vadd.f32 %v1931_v24, %v1919_v34 }
 0x48e   : > { %v1951_v22 = vadd.f32 %v1947_v62, %v1935_v59  ;;  %v1977_v50 = vpop.permute.xlu0 %1976 }
 0x48f   : > { %v1980_v41 = vsel %vm1978_vm11, %v1975_v33, %v1977_v50  ;;  %vm2041_vm11 = vcmask 441344  }
 0x490   : > { %v1967_v48 = vadd.f32 %v1963_v18, %v1951_v22  ;;  %v1930_v19 = vpop.permute.xlu1 %1929  ;;  %v2042_v2 = vsel %vm2041_vm11, %v5169_v53, %v5199_v39 }
 0x491   : > { %v1932_v17 = vsel %vm5590_vm4, %v1928_v55, %v1930_v19  ;;  %v2101_v38 = vpop.permute.xlu2 %2100 }
 0x492   : > { %v1983_v9 = vadd.f32 %v1979_v8, %v1967_v48  ;;  %v1936_v12 = vadd.f32 %v1932_v17, %v1920_v11 }
 0x494   : > { %v1999_v36 = vadd.f32 %v1995_v20, %v1983_v9 }
 0x496   : > { %v2014_v33 = vadd.f32 %v2010_v46, %v1999_v36  ;;  %v1993_v63 = vpop.permute.xlu0 %1992 }
 0x497   : > { %v1996_v52 = vsel %vm1994_vm7, %v5173_v16, %v1993_v63 }
 0x498   : > { %v2030_v8 = vadd.f32 %v2026_v37, %v2014_v33  ;;  %v1945_v56 = vpop.permute.xlu1 %1944 }
 0x499   : > { %v1948_v27 = vsel %vm1946_vm1, %v1943_v6, %v1945_v56  ;;  %v2117_v7 = vpop.permute.xlu2 %2116 }
 0x49a   : > { %v2046_v35 = vadd.f32 %v2042_v2, %v2030_v8  ;;  %v1952_v55 = vadd.f32 %v1948_v27, %v1936_v12 }
 0x49c   : > { %v2062_v31 = vadd.f32 %v2058_v54, %v2046_v35 }
 0x49e   : > { %v2078_v43 = vadd.f32 %v2074_v29, %v2062_v31  ;;  %v2009_v49 = vpop.permute.xlu0 %2008 }
 0x49f   : > { %v2011_v51 = vsel %vm5592_vm13, %v5182_v14, %v2009_v49 }
 0x4a0   : > { %v2093_v53 = vadd.f32 %v2089_v0, %v2078_v43  ;;  %v1961_v18 = vpop.permute.xlu1 %1960 }
 0x4a1   : > { %v1964_v6 = vsel %vm1962_vm15, %v5190_v23, %v1961_v18  ;;  %v2133_v34 = vpop.permute.xlu2 %2132  ;;  %vm2104_vm15 = vcmask 252928  }
 0x4a2   : > { %v1968_v40 = vadd.f32 %v1964_v6, %v1952_v55  ;;  %v2163_v55 = vstv %s2162_s26 }
 0x4a4   : > { %v1984_v21 = vadd.f32 %v1980_v41, %v1968_v40 }
 0x4a6   : > { %v2024_v10 = vpop.permute.xlu0 %2023  ;;  %v2000_v3 = vadd.f32 %v1996_v52, %v1984_v21 }
 0x4a7   : > { %v2027_v13 = vsel %vm2025_vm8, %v5188_v42, %v2024_v10 }
 0x4a8   : > { %v2099_v15 = vpop.permute.xlu1 %2098  ;;  %v2015_v23 = vadd.f32 %v2011_v51, %v2000_v3 }
 0x4a9   : > { %v2105_v62 = vsel %vm2104_vm15, %v2099_v15, %v2101_v38  ;;  %v2149_v48 = vpop.permute.xlu2 %2148 }
 0x4aa   : > { %v2031_v32 = vadd.f32 %v2027_v13, %v2015_v23 }
 0x4ae   : > { %v2040_v57 = vpop.permute.xlu0 %2039 }
 0x4af   : > { %v2043_v30 = vsel %vm2041_vm11, %v5199_v39, %v2040_v57  ;;  %v2109_v39 = vadd.f32 %v2105_v62, %v2093_v53 }
 0x4b0   : > { %v2115_v58 = vpop.permute.xlu1 %2114  ;;  %v2047_v16 = vadd.f32 %v2043_v30, %v2031_v32 }
 0x4b1   : > { %v2121_v41 = vsel %vm2120_vm9, %v2115_v58, %v2117_v7 }
 0x4b2   : > { %v2125_v12 = vadd.f32 %v2121_v41, %v2109_v39 }
 0x4b6   : > { %v2056_v1 = vpop.permute.xlu0 %2055 }
 0x4b7   : > { %v2059_v24 = vsel %vm2057_vm12, %v5205_v60, %v2056_v1 }
 0x4b8   : > { %v2131_v4 = vpop.permute.xlu1 %2130  ;;  %v2063_v14 = vadd.f32 %v2059_v24, %v2047_v16 }
 0x4b9   : > { %v2137_v60 = vsel %vm2136_vm5, %v2131_v4, %v2133_v34 }
 0x4ba   : > { %v2141_v46 = vadd.f32 %v2137_v60, %v2125_v12 }
 0x4be   : > { %v2072_v26 = vpop.permute.xlu0 %2071 }
 0x4bf   : > { %v2075_v59 = vsel %vm2073_vm14, %v2070_v61, %v2072_v26 }
 0x4c0   : > { %v2079_v42 = vadd.f32 %v2075_v59, %v2063_v14  ;;  %v2147_v19 = vpop.permute.xlu1 %2146 }
 0x4c1   : > { %v2153_v20 = vsel %vm2152_vm0, %v2147_v19, %v2149_v48 }
 0x4c2   : > { %v2157_v63 = vadd.f32 %v2153_v20, %v2141_v46 }
 0x4c4   : > { %v2160_v27 = vadd.f32 %v2157_v63, %v3889_v44  ;;  %v2175_v44 = vlaneseq }
 0x4c6   : > { %v2088_v25 = vpop.permute.xlu0 %2087  ;;  %v2164_v31 = vadd.f32 %v2163_v55, %v2160_v27 }
 0x4c7   : > { %v2090_v22 = vsel %vm1719_vm3, %v2086_v47, %v2088_v25  ;;  %vm2177_vm3 = vcmp.lt.s32.totalorder %v2175_v44, 192 }
 0x4c8   : > { %v2094_v17 = vadd.f32 %v2090_v22, %v2079_v42 }
 0x4ce   : > { %v2103_v28 = vpop.permute.xlu0 %2102 }
 0x4cf   : > { %v2106_v11 = vsel %vm2104_vm15, %v2101_v38, %v2103_v28 }
 0x4d0   : > { %v2110_v61 = vadd.f32 %v2106_v11, %v2094_v17 }
 0x4d6   : > { %v2119_v45 = vpop.permute.xlu0 %2118 }
 0x4d7   : > { %v2122_v9 = vsel %vm2120_vm9, %v2117_v7, %v2119_v45 }
 0x4d8   : > { %v2126_v33 = vadd.f32 %v2122_v9, %v2110_v61 }
 0x4de   : > { %v2135_v50 = vpop.permute.xlu0 %2134 }
 0x4df   : > { %v2138_v36 = vsel %vm2136_vm5, %v2133_v34, %v2135_v50 }
 0x4e0   : > { %v2142_v37 = vadd.f32 %v2138_v36, %v2126_v33 }
 0x4e6   : > { %v2151_v8 = vpop.permute.xlu0 %2150 }
 0x4e7   : > { %v2154_v56 = vsel %vm2152_vm0, %v2149_v48, %v2151_v8 }
 0x4e8   : > { %v2158_v2 = vadd.f32 %v2154_v56, %v2142_v37 }
 0x4ea   : > { %v2161_v35 = vadd.f32 %v2158_v2, %v3881_v5 }
 0x4ec   : > { %v2165_v54 = vadd.f32 %v2163_v55, %v2161_v35 }
 0x4ee   : > { %v2168_v47 = vrot.slane %v2165_v54, 7 }
 0x4f0   : > { %v2169_v29 = vsel %vm593_vm2, %v2164_v31, %v2168_v47  ;;  %vm5597_vm2 = vcmask 867328  }
 0x4f1   : > { %2170 = vrot.lane.b32.xlu2 %v2169_v29, %s5594_s22  ;;  %s3030_s22 = scalar_lea.hbm %s5595_s18, 8 }
 0x4f2   : > { %p3032_p13 = scmp.lt.s32.totalorder %s3030_s22, %s3026_s17 }
 0x4f4   : > { %p3033_p9 = por %p3032_p13, %p3031_p12 }
 0x4f6   : > { %p3034_p7 = pnand %p3033_p9, %p3029_p8 }
 0x54b   : > { %v2171_v5 = vpop.permute.xlu2 %2170 }
 0x54c   : > { %v2172_v43 = vrot.slane %v2171_v5, 1 }
 0x54e   : > { %v2173_v49 = vsel %vm5597_vm2, %v2171_v5, %v2172_v43 }
 0x54f   : > { %2179 = vst.msk [vmem:[%s400_s25] sm:$0x3] %vm2177_vm3, %v2173_v49 }
 0x550   : > { %3037 = shalt.err (!%p3034_p7)
}
 0x551   : > { %2398 = dma.vmem_to_hbm [thread:$0]  (%p3367_p4), %s2196_s28, 32, %s2198_s27, %s2181_s7  }
 0x552 PF: > { %s5598_s12 = sld [smem:[#allocation14_spill]]  ;;  %p2418_p10 = scmp.ge.s32.totalorder %s3140_s16, 2 }
 0x554   : > { %p2412_p11 = pnand %p2418_p10, %p3374_p6 }
 0x556   : > { %p2413_p0 = pneg %p2412_p11 }
 0x558   : > { %s2209_s15 = sand.u32 1, %s5598_s12  }
 0x559   : > { %s2210_s10 = scalar_lea.sflag [#allocation5], %s2209_s15 }
 0x55a   : > { %3095 = dma.done.wait (%p2413_p0), %s2210_s10, 32  }
 0x55b   : > { %3097 = vsyncadd (%p2413_p0), %s2210_s10, 4294967264  ;;  %s28_s16 = sadd.s32 1, %s3140_s16   ;;  %s5600_s23 = sld [smem:[#allocation15_spill]] }
 0x55c   : > { %p25_p2 = scmp.ge.s32.totalorder %s28_s16, 6   ;;  %s5601_s12 = sld [smem:[#allocation22_spill]] }
 0x55d   : > { %s5602_s7 = sld [smem:[#allocation17_spill]]  ;;  %s5605_s29 = smov %s3104_s30 }
 0x55e   : > { %s5603_s21 = sld [smem:[#allocation18_spill]]  ;;  %s5606_s30 = smov %s3108_s9 }
 0x55f   : > { %s5604_s15 = sld [smem:[#allocation19_spill]]  ;;  %s5607_s9 = smov %s3394_s19 }
 0x560   : > { %s5608_s10 = smov %s3116_s11  ;;  %s5610_s13 = smov %s3132_s14 }
 0x561   : > { %s5609_s11 = smov %s5600_s23  ;;  %27 = sbr.rel (!%p25_p2) target bundleno = 15 (0xf), region = 114 }
 0x564   : > { %s5611_s14 = smov %s5603_s21 }
 0x566   :  { %2216 = vsyncpa [#allocation4], 1 }
 0x567   :  { %2218 = vsyncpa [#allocation4 + $0x1], 1 }
 0x568   :  { %2219 = vsyncpa [#allocation7], 1 }
 0x569   :  { %2221 = vsyncpa [#allocation7 + $0x1], 1 }
 0x56a   :  { %2222 = vsyncpa [#allocation5], 1 }
 0x56b   :  { %2224 = vsyncpa [#allocation5 + $0x1], 1 }

</bundles_post_ra>
